<compile_context>
chip_gen: v5e
topology: v5e:2x2
jax: 0.10.0
libtpu: 0.0.40
codegen_flags: <defaults>
</compile_context>

<pallas_src>
import functools

import jax
import jax.numpy as jnp
from jax.experimental import pallas as pl
from jax.experimental.pallas import tpu as pltpu


# ----------------------------- Pallas kernel ------------------------------ #
def _conv_taps_kernel(x_ref, h_ref, w_ref, b_ref, o_ref, xs_ref,
                      *, kh, kw, th, wo, slope):
    """One (batch, row-tile) step of a stride-1 KHxKW conv + bias + LeakyReLU.

    x_ref : (1, TH, Wp, Cin)     main input rows (bf16)
    h_ref : (1, KH-1, Wp, Cin)   halo rows just below the tile (bf16)
    w_ref : (KH*KW, Cin, Cout)   per-tap weight matrices (f32)
    b_ref : (1, Cout)            bias (f32)
    o_ref : (1, TH, Wo, Cout)    output tile
    xs_ref: (TH+KH-1, Wp, Cin)   VMEM scratch: tile + halo
    """
    cin = x_ref.shape[-1]
    cout = o_ref.shape[-1]

    # Assemble the halo'd input tile once per grid step.
    xs_ref[:th] = x_ref[0]
    xs_ref[th:] = h_ref[0]

    acc = jnp.zeros((th * wo, cout), jnp.float32)
    for dy in range(kh):
        for dx in range(kw):
            # Contiguous shifted window; no strided loads needed.
            xt = xs_ref[dy:dy + th, dx:dx + wo, :].astype(jnp.float32)
            xt = xt.reshape(th * wo, cin)
            acc = acc + jnp.dot(xt, w_ref[dy * kw + dx],
                                preferred_element_type=jnp.float32)

    acc = acc + b_ref[...]                        # (1, Cout) broadcast, f32
    acc = jnp.where(acc >= 0, acc, slope * acc)   # LeakyReLU(0.2), f32 epilogue
    o_ref[0] = acc.reshape(th, wo, cout).astype(o_ref.dtype)


# --------------------------- tiling / wrappers ----------------------------- #
def _pick_tile_rows(ho, wp, wo, cin, cout, budget_bytes=8 << 20):
    """Row-tile height from a VMEM budget (counts 128-lane padding of C)."""
    lane = 128
    cin_p = -(-cin // lane) * lane
    cout_p = -(-cout // lane) * lane
    per_row = (2 * wp * cin_p * 2        # bf16 input block, double-buffered
               + 2 * wo * cout_p * 4     # output block, double-buffered
               + 2 * wo * cout_p * 4)    # f32 accumulator / epilogue temps
    th = max(8, budget_bytes // max(per_row, 1))
    return int(min(th, ho))


def _conv_stride1_pallas(xp, w_taps, b, *, kh, kw, ho, wo, out_dtype,
                         slope=0.2):
    """Stride-1 KHxKW conv + bias + LeakyReLU on an already zero-padded NHWC
    input xp of shape (N, ho+kh-1, wo+kw-1, cin)."""
    n, hp, wp, cin = xp.shape
    cout = w_taps.shape[-1]
    assert hp == ho + kh - 1 and wp == wo + kw - 1

    th = _pick_tile_rows(ho, wp, wo, cin, cout)
    n_tiles = pl.cdiv(ho, th)
    ho_pad = n_tiles * th

    # Pad output rows up to a multiple of the tile height; the extra zero
    # rows only produce output rows that are sliced off below.
    extra = ho_pad + kh - 1 - hp
    if extra > 0:
        xp = jnp.pad(xp, ((0, 0), (0, extra), (0, 0), (0, 0)))

    # Per-tile halo: the (KH-1) input rows just below each tile.  Tiny array
    # ((KH-1)/TH of the input) that lets every operand use plain Blocked
    # specs, keeping the whole pipeline auto double-buffered.
    halo = jnp.concatenate(
        [xp[:, (i + 1) * th:(i + 1) * th + kh - 1] for i in range(n_tiles)],
        axis=1)                                   # (N, n_tiles*(KH-1), Wp, Cin)

    w_mat = w_taps.reshape(kh * kw, cin, cout).astype(jnp.float32)
    b2 = b.reshape(1, cout).astype(jnp.float32)

    kernel = functools.partial(_conv_taps_kernel, kh=kh, kw=kw, th=th, wo=wo,
                               slope=slope)
    out = pl.pallas_call(
        kernel,
        out_shape=jax.ShapeDtypeStruct((n, ho_pad, wo, cout), out_dtype),
        grid_spec=pltpu.PrefetchScalarGridSpec(
            num_scalar_prefetch=0,
            grid=(n, n_tiles),
            in_specs=[
                pl.BlockSpec((1, th, wp, cin), lambda b_, i: (b_, i, 0, 0)),
                pl.BlockSpec((1, kh - 1, wp, cin), lambda b_, i: (b_, i, 0, 0)),
                pl.BlockSpec((kh * kw, cin, cout), lambda b_, i: (0, 0, 0)),
                pl.BlockSpec((1, cout), lambda b_, i: (0, 0)),
            ],
            out_specs=pl.BlockSpec((1, th, wo, cout),
                                   lambda b_, i: (b_, i, 0, 0)),
            scratch_shapes=[pltpu.VMEM((th + kh - 1, wp, cin), xp.dtype)],
        ),
        compiler_params=pltpu.CompilerParams(
            dimension_semantics=("parallel", "parallel"),
            vmem_limit_bytes=48 * 1024 * 1024),
    )(xp, halo, w_mat, b2)

    return out[:, :ho] if ho_pad != ho else out


def conv3x3_leaky_pallas(x_nhwc, w_hwio, bias, *, stride, out_dtype=None,
                         slope=0.2):
    """3x3 conv (pad=1, stride 1 or 2) + bias + LeakyReLU, NHWC activations."""
    if out_dtype is None:
        out_dtype = x_nhwc.dtype
    n, h, w, cin = x_nhwc.shape
    cout = w_hwio.shape[-1]
    x = x_nhwc.astype(jnp.bfloat16)              # bf16 activations in HBM

    if stride == 1:
        xp = jnp.pad(x, ((0, 0), (1, 1), (1, 1), (0, 0)))
        return _conv_stride1_pallas(xp, w_hwio, bias, kh=3, kw=3,
                                    ho=h, wo=w, out_dtype=out_dtype,
                                    slope=slope)

    assert stride == 2, "Conv2 only uses stride 1 and 2"
    ho = (h - 1) // 2 + 1
    wo = (w - 1) // 2 + 1
    # Space-to-depth: a stride-2 3x3 conv == a stride-1 2x2 conv over the
    # 2x2-phase-packed input with 4*Cin channels (7 of the 16 remapped taps
    # are zero).  All in-kernel loads stay contiguous and each tap matmul
    # gets a 4x deeper contraction.
    hp2, wp2 = 2 * (ho + 1), 2 * (wo + 1)
    xp = jnp.pad(x, ((0, 0), (1, hp2 - h - 1), (1, wp2 - w - 1), (0, 0)))
    xs2d = xp.reshape(n, ho + 1, 2, wo + 1, 2, cin)
    xs2d = xs2d.transpose(0, 1, 3, 2, 4, 5).reshape(n, ho + 1, wo + 1, 4 * cin)

    # Remap weights: W2[ay, ax, (py*2+px)*Cin + ci, co] = W[2ay+py, 2ax+px, ci, co]
    wpad = jnp.pad(w_hwio, ((0, 1), (0, 1), (0, 0), (0, 0)))    # (4,4,Cin,Cout)
    w2 = wpad.reshape(2, 2, 2, 2, cin, cout)                    # [ay,py,ax,px]
    w2 = w2.transpose(0, 2, 1, 3, 4, 5).reshape(2, 2, 4 * cin, cout)

    return _conv_stride1_pallas(xs2d, w2, bias, kh=2, kw=2,
                                ho=ho, wo=wo, out_dtype=out_dtype, slope=slope)


# ------------------------------ parameters -------------------------------- #
def _init_conv_params(key, cin, cout):
    kw, kb = jax.random.split(key)
    bound = 1.0 / (cin * 9) ** 0.5               # PyTorch default-style init
    w = jax.random.uniform(kw, (3, 3, cin, cout), jnp.float32, -bound, bound)
    b = jax.random.uniform(kb, (cout,), jnp.float32, -bound, bound)
    return w, b


class Conv2Pallas:
    """Pallas equivalent of refine.Conv2."""

    def __init__(self, in_planes, out_planes, stride=2, *, seed=42):
        k1, k2 = jax.random.split(jax.random.PRNGKey(seed))
        self.stride = stride
        self.w1, self.b1 = _init_conv_params(k1, in_planes, out_planes)
        self.w2, self.b2 = _init_conv_params(k2, out_planes, out_planes)

    def __call__(self, x_nchw):
        x = jnp.transpose(x_nchw, (0, 2, 3, 1))                 # NCHW -> NHWC
        # Intermediate activation stays bf16 (halves HBM traffic between the
        # two pallas_calls); the final output is f32.
        x = conv3x3_leaky_pallas(x, self.w1, self.b1, stride=self.stride,
                                 out_dtype=jnp.bfloat16)
        x = conv3x3_leaky_pallas(x, self.w2, self.b2, stride=1,
                                 out_dtype=jnp.float32)
        return jnp.transpose(x, (0, 3, 1, 2))                   # NHWC -> NCHW


# ------------------------------- reference -------------------------------- #
def _ref_conv_leaky(x_nhwc, w_hwio, b, stride, slope=0.2):
    y = jax.lax.conv_general_dilated(
        x_nhwc, w_hwio, (stride, stride), ((1, 1), (1, 1)),
        dimension_numbers=("NHWC", "HWIO", "NHWC"))
    y = y + b
    return jnp.where(y >= 0, y, slope * y)


if __name__ == "__main__":
    key = jax.random.PRNGKey(0)
    x = jax.random.normal(key, (2, 4, 16, 16), jnp.float32)     # NCHW

    model = Conv2Pallas(in_planes=4, out_planes=8, stride=2)
    fwd = jax.jit(model.__call__)
    y = jax.block_until_ready(fwd(x))
    assert y.shape == (2, 8, 8, 8), y.shape

    # Pure-JAX (XLA conv) reference with the same parameters (f32).
    xh = jnp.transpose(x, (0, 2, 3, 1))
    r = _ref_conv_leaky(xh, model.w1, model.b1, 2)
    r = _ref_conv_leaky(r, model.w2, model.b2, 1)
    r = jnp.transpose(r, (0, 3, 1, 2))
    yf = y.astype(jnp.float32)
    max_err = float(jnp.max(jnp.abs(yf - r)))
    assert jnp.allclose(yf, r, rtol=5e-2, atol=5e-2), max_err

    print("KERNEL_OK")
</pallas_src>

<mosaic_0001>
module attributes {stable_mosaic.version = 11 : i64} {
  func.func @_conv_taps_kernel(%arg0: i32, %arg1: i32, %arg2: memref<1x8x9x16xbf16, #tpu.memory_space<vmem>>, %arg3: memref<1x1x9x16xbf16, #tpu.memory_space<vmem>>, %arg4: memref<4x16x8xf32, #tpu.memory_space<vmem>>, %arg5: memref<1x8xf32, #tpu.memory_space<vmem>>, %arg6: memref<1x8x8x8xbf16, #tpu.memory_space<vmem>>, %arg7: memref<9x9x16xbf16, #tpu.memory_space<vmem>>) attributes {dimension_semantics = [#tpu.dimension_semantics<parallel>, #tpu.dimension_semantics<parallel>], iteration_bounds = array<i64: 2, 1>, scalar_prefetch = 0 : i64, scratch_operands = 1 : i64, tpu.core_type = #tpu.core_type<tc>, window_params = [{transform_indices = @transform_0, window_bounds = array<i64: 1, 8, 9, 16>}, {transform_indices = @transform_1, window_bounds = array<i64: 1, 1, 9, 16>}, {pipeline_mode = #tpu.pipeline_mode<synchronous>, transform_indices = @transform_2, window_bounds = array<i64: 4, 16, 8>}, {pipeline_mode = #tpu.pipeline_mode<synchronous>, transform_indices = @transform_3, window_bounds = array<i64: 1, 8>}, {transform_indices = @transform_4, window_bounds = array<i64: 1, 8, 8, 8>}]} {
    %c0 = arith.constant 0 : index
    %c0_0 = arith.constant 0 : index
    %c0_1 = arith.constant 0 : index
    %c0_2 = arith.constant 0 : index
    %0 = vector.load %arg2[%c0, %c0_0, %c0_1, %c0_2] : memref<1x8x9x16xbf16, #tpu.memory_space<vmem>>, vector<1x8x9x16xbf16>
    %1 = vector.shape_cast %0 : vector<1x8x9x16xbf16> to vector<8x9x16xbf16>
    %c0_3 = arith.constant 0 : index
    %c0_4 = arith.constant 0 : index
    %c0_5 = arith.constant 0 : index
    %2 = vector.load %arg7[%c0_3, %c0_4, %c0_5] : memref<9x9x16xbf16, #tpu.memory_space<vmem>>, vector<8x9x16xbf16>
    tpu.vector_store %arg7[%c0_3, %c0_4, %c0_5], %1 {strides = array<i32>} : memref<9x9x16xbf16, #tpu.memory_space<vmem>>, vector<8x9x16xbf16>,
    %c0_6 = arith.constant 0 : index
    %c0_7 = arith.constant 0 : index
    %c0_8 = arith.constant 0 : index
    %c0_9 = arith.constant 0 : index
    %3 = vector.load %arg3[%c0_6, %c0_7, %c0_8, %c0_9] : memref<1x1x9x16xbf16, #tpu.memory_space<vmem>>, vector<1x1x9x16xbf16>
    %4 = vector.shape_cast %3 : vector<1x1x9x16xbf16> to vector<1x9x16xbf16>
    %c8 = arith.constant 8 : index
    %c0_10 = arith.constant 0 : index
    %c0_11 = arith.constant 0 : index
    %5 = vector.load %arg7[%c8, %c0_10, %c0_11] : memref<9x9x16xbf16, #tpu.memory_space<vmem>>, vector<1x9x16xbf16>
    tpu.vector_store %arg7[%c8, %c0_10, %c0_11], %4 {strides = array<i32>} : memref<9x9x16xbf16, #tpu.memory_space<vmem>>, vector<1x9x16xbf16>,
    %cst = arith.constant 0.000000e+00 : f32
    %6 = vector.broadcast %cst : f32 to vector<64x8xf32>
    %c0_12 = arith.constant 0 : index
    %c0_13 = arith.constant 0 : index
    %c0_14 = arith.constant 0 : index
    %7 = vector.load %arg7[%c0_12, %c0_13, %c0_14] : memref<9x9x16xbf16, #tpu.memory_space<vmem>>, vector<8x8x16xbf16>
    %8 = arith.extf %7 : vector<8x8x16xbf16> to vector<8x8x16xf32>
    %9 = vector.shape_cast %8 : vector<8x8x16xf32> to vector<64x16xf32>
    %c0_15 = arith.constant 0 : index
    %c0_16 = arith.constant 0 : index
    %c0_17 = arith.constant 0 : index
    %10 = vector.load %arg4[%c0_15, %c0_16, %c0_17] : memref<4x16x8xf32, #tpu.memory_space<vmem>>, vector<1x16x8xf32>
    %11 = vector.shape_cast %10 : vector<1x16x8xf32> to vector<16x8xf32>
    %cst_18 = arith.constant dense<0.000000e+00> : vector<64x8xf32>
    %12 = tpu.matmul %9, %11, %cst_18 {dimension_numbers = #tpu.dot_dimension_numbers<[1], [0], [0], [1], [0, 0, 1, 1], [], []>} : vector<64x16xf32>, vector<16x8xf32>, vector<64x8xf32> -> vector<64x8xf32>
    %13 = arith.addf %6, %12 : vector<64x8xf32>
    %c0_19 = arith.constant 0 : index
    %c1 = arith.constant 1 : index
    %c0_20 = arith.constant 0 : index
    %14 = vector.load %arg7[%c0_19, %c1, %c0_20] : memref<9x9x16xbf16, #tpu.memory_space<vmem>>, vector<8x8x16xbf16>
    %15 = arith.extf %14 : vector<8x8x16xbf16> to vector<8x8x16xf32>
    %16 = vector.shape_cast %15 : vector<8x8x16xf32> to vector<64x16xf32>
    %c1_21 = arith.constant 1 : index
    %c0_22 = arith.constant 0 : index
    %c0_23 = arith.constant 0 : index
    %17 = vector.load %arg4[%c1_21, %c0_22, %c0_23] : memref<4x16x8xf32, #tpu.memory_space<vmem>>, vector<1x16x8xf32>
    %18 = vector.shape_cast %17 : vector<1x16x8xf32> to vector<16x8xf32>
    %cst_24 = arith.constant dense<0.000000e+00> : vector<64x8xf32>
    %19 = tpu.matmul %16, %18, %cst_24 {dimension_numbers = #tpu.dot_dimension_numbers<[1], [0], [0], [1], [0, 0, 1, 1], [], []>} : vector<64x16xf32>, vector<16x8xf32>, vector<64x8xf32> -> vector<64x8xf32>
    %20 = arith.addf %13, %19 : vector<64x8xf32>
    %c1_25 = arith.constant 1 : index
    %c0_26 = arith.constant 0 : index
    %c0_27 = arith.constant 0 : index
    %21 = vector.load %arg7[%c1_25, %c0_26, %c0_27] : memref<9x9x16xbf16, #tpu.memory_space<vmem>>, vector<8x8x16xbf16>
    %22 = arith.extf %21 : vector<8x8x16xbf16> to vector<8x8x16xf32>
    %23 = vector.shape_cast %22 : vector<8x8x16xf32> to vector<64x16xf32>
    %c2 = arith.constant 2 : index
    %c0_28 = arith.constant 0 : index
    %c0_29 = arith.constant 0 : index
    %24 = vector.load %arg4[%c2, %c0_28, %c0_29] : memref<4x16x8xf32, #tpu.memory_space<vmem>>, vector<1x16x8xf32>
    %25 = vector.shape_cast %24 : vector<1x16x8xf32> to vector<16x8xf32>
    %cst_30 = arith.constant dense<0.000000e+00> : vector<64x8xf32>
    %26 = tpu.matmul %23, %25, %cst_30 {dimension_numbers = #tpu.dot_dimension_numbers<[1], [0], [0], [1], [0, 0, 1, 1], [], []>} : vector<64x16xf32>, vector<16x8xf32>, vector<64x8xf32> -> vector<64x8xf32>
    %27 = arith.addf %20, %26 : vector<64x8xf32>
    %c1_31 = arith.constant 1 : index
    %c1_32 = arith.constant 1 : index
    %c0_33 = arith.constant 0 : index
    %28 = vector.load %arg7[%c1_31, %c1_32, %c0_33] : memref<9x9x16xbf16, #tpu.memory_space<vmem>>, vector<8x8x16xbf16>
    %29 = arith.extf %28 : vector<8x8x16xbf16> to vector<8x8x16xf32>
    %30 = vector.shape_cast %29 : vector<8x8x16xf32> to vector<64x16xf32>
    %c3 = arith.constant 3 : index
    %c0_34 = arith.constant 0 : index
    %c0_35 = arith.constant 0 : index
    %31 = vector.load %arg4[%c3, %c0_34, %c0_35] : memref<4x16x8xf32, #tpu.memory_space<vmem>>, vector<1x16x8xf32>
    %32 = vector.shape_cast %31 : vector<1x16x8xf32> to vector<16x8xf32>
    %cst_36 = arith.constant dense<0.000000e+00> : vector<64x8xf32>
    %33 = tpu.matmul %30, %32, %cst_36 {dimension_numbers = #tpu.dot_dimension_numbers<[1], [0], [0], [1], [0, 0, 1, 1], [], []>} : vector<64x16xf32>, vector<16x8xf32>, vector<64x8xf32> -> vector<64x8xf32>
    %34 = arith.addf %27, %33 : vector<64x8xf32>
    %c0_37 = arith.constant 0 : index
    %c0_38 = arith.constant 0 : index
    %35 = vector.load %arg5[%c0_37, %c0_38] : memref<1x8xf32, #tpu.memory_space<vmem>>, vector<1x8xf32>
    %36 = vector.broadcast %35 : vector<1x8xf32> to vector<64x8xf32>
    %37 = arith.addf %34, %36 : vector<64x8xf32>
    %cst_39 = arith.constant 0.000000e+00 : f32
    %38 = vector.broadcast %cst_39 : f32 to vector<64x8xf32>
    %39 = arith.cmpf oge, %37, %38 : vector<64x8xf32>
    %cst_40 = arith.constant 2.000000e-01 : f32
    %40 = vector.broadcast %cst_40 : f32 to vector<64x8xf32>
    %41 = arith.mulf %40, %37 : vector<64x8xf32>
    %42 = arith.select %39, %37, %41 : vector<64x8xi1>, vector<64x8xf32>
    %43 = vector.shape_cast %42 : vector<64x8xf32> to vector<8x8x8xf32>
    %44 = arith.truncf %43 : vector<8x8x8xf32> to vector<8x8x8xbf16>
    %c0_41 = arith.constant 0 : index
    %c0_42 = arith.constant 0 : index
    %c0_43 = arith.constant 0 : index
    %c0_44 = arith.constant 0 : index
    %45 = vector.load %arg6[%c0_41, %c0_42, %c0_43, %c0_44] : memref<1x8x8x8xbf16, #tpu.memory_space<vmem>>, vector<1x8x8x8xbf16>
    %46 = vector.shape_cast %45 : vector<1x8x8x8xbf16> to vector<8x8x8xbf16>
    %47 = vector.shape_cast %44 : vector<8x8x8xbf16> to vector<1x8x8x8xbf16>
    tpu.vector_store %arg6[%c0_41, %c0_42, %c0_43, %c0_44], %47 {strides = array<i32>} : memref<1x8x8x8xbf16, #tpu.memory_space<vmem>>, vector<1x8x8x8xbf16>,
    return
  }
  func.func @transform_0(%arg0: i32, %arg1: i32) -> (i32, i32, i32, i32) {
    %c0_i32 = arith.constant 0 : i32
    %c0_i32_0 = arith.constant 0 : i32
    %c0_i32_1 = arith.constant 0 : i32
    return %arg0, %arg1, %c0_i32, %c0_i32_0 : i32, i32, i32, i32
  }
  func.func @transform_1(%arg0: i32, %arg1: i32) -> (i32, i32, i32, i32) {
    %c0_i32 = arith.constant 0 : i32
    %c0_i32_0 = arith.constant 0 : i32
    %c0_i32_1 = arith.constant 0 : i32
    return %arg0, %arg1, %c0_i32, %c0_i32_0 : i32, i32, i32, i32
  }
  func.func @transform_2(%arg0: i32, %arg1: i32) -> (i32, i32, i32) {
    %c0_i32 = arith.constant 0 : i32
    %c0_i32_0 = arith.constant 0 : i32
    %c0_i32_1 = arith.constant 0 : i32
    %c0_i32_2 = arith.constant 0 : i32
    return %c0_i32, %c0_i32_0, %c0_i32_1 : i32, i32, i32
  }
  func.func @transform_3(%arg0: i32, %arg1: i32) -> (i32, i32) {
    %c0_i32 = arith.constant 0 : i32
    %c0_i32_0 = arith.constant 0 : i32
    %c0_i32_1 = arith.constant 0 : i32
    return %c0_i32, %c0_i32_0 : i32, i32
  }
  func.func @transform_4(%arg0: i32, %arg1: i32) -> (i32, i32, i32, i32) {
    %c0_i32 = arith.constant 0 : i32
    %c0_i32_0 = arith.constant 0 : i32
    %c0_i32_1 = arith.constant 0 : i32
    return %arg0, %arg1, %c0_i32, %c0_i32_0 : i32, i32, i32, i32
  }
}

module attributes {stable_mosaic.version = 11 : i64} {
  func.func @_conv_taps_kernel(%arg0: i32, %arg1: i32, %arg2: memref<1x8x10x8xbf16, #tpu.memory_space<vmem>>, %arg3: memref<1x2x10x8xbf16, #tpu.memory_space<vmem>>, %arg4: memref<9x8x8xf32, #tpu.memory_space<vmem>>, %arg5: memref<1x8xf32, #tpu.memory_space<vmem>>, %arg6: memref<1x8x8x8xf32, #tpu.memory_space<vmem>>, %arg7: memref<10x10x8xbf16, #tpu.memory_space<vmem>>) attributes {dimension_semantics = [#tpu.dimension_semantics<parallel>, #tpu.dimension_semantics<parallel>], iteration_bounds = array<i64: 2, 1>, scalar_prefetch = 0 : i64, scratch_operands = 1 : i64, tpu.core_type = #tpu.core_type<tc>, window_params = [{transform_indices = @transform_0, window_bounds = array<i64: 1, 8, 10, 8>}, {transform_indices = @transform_1, window_bounds = array<i64: 1, 2, 10, 8>}, {pipeline_mode = #tpu.pipeline_mode<synchronous>, transform_indices = @transform_2, window_bounds = array<i64: 9, 8, 8>}, {pipeline_mode = #tpu.pipeline_mode<synchronous>, transform_indices = @transform_3, window_bounds = array<i64: 1, 8>}, {transform_indices = @transform_4, window_bounds = array<i64: 1, 8, 8, 8>}]} {
    %c0 = arith.constant 0 : index
    %c0_0 = arith.constant 0 : index
    %c0_1 = arith.constant 0 : index
    %c0_2 = arith.constant 0 : index
    %0 = vector.load %arg2[%c0, %c0_0, %c0_1, %c0_2] : memref<1x8x10x8xbf16, #tpu.memory_space<vmem>>, vector<1x8x10x8xbf16>
    %1 = vector.shape_cast %0 : vector<1x8x10x8xbf16> to vector<8x10x8xbf16>
    %c0_3 = arith.constant 0 : index
    %c0_4 = arith.constant 0 : index
    %c0_5 = arith.constant 0 : index
    %2 = vector.load %arg7[%c0_3, %c0_4, %c0_5] : memref<10x10x8xbf16, #tpu.memory_space<vmem>>, vector<8x10x8xbf16>
    tpu.vector_store %arg7[%c0_3, %c0_4, %c0_5], %1 {strides = array<i32>} : memref<10x10x8xbf16, #tpu.memory_space<vmem>>, vector<8x10x8xbf16>,
    %c0_6 = arith.constant 0 : index
    %c0_7 = arith.constant 0 : index
    %c0_8 = arith.constant 0 : index
    %c0_9 = arith.constant 0 : index
    %3 = vector.load %arg3[%c0_6, %c0_7, %c0_8, %c0_9] : memref<1x2x10x8xbf16, #tpu.memory_space<vmem>>, vector<1x2x10x8xbf16>
    %4 = vector.shape_cast %3 : vector<1x2x10x8xbf16> to vector<2x10x8xbf16>
    %c8 = arith.constant 8 : index
    %c0_10 = arith.constant 0 : index
    %c0_11 = arith.constant 0 : index
    %5 = vector.load %arg7[%c8, %c0_10, %c0_11] : memref<10x10x8xbf16, #tpu.memory_space<vmem>>, vector<2x10x8xbf16>
    tpu.vector_store %arg7[%c8, %c0_10, %c0_11], %4 {strides = array<i32>} : memref<10x10x8xbf16, #tpu.memory_space<vmem>>, vector<2x10x8xbf16>,
    %cst = arith.constant 0.000000e+00 : f32
    %6 = vector.broadcast %cst : f32 to vector<64x8xf32>
    %c0_12 = arith.constant 0 : index
    %c0_13 = arith.constant 0 : index
    %c0_14 = arith.constant 0 : index
    %7 = vector.load %arg7[%c0_12, %c0_13, %c0_14] : memref<10x10x8xbf16, #tpu.memory_space<vmem>>, vector<8x8x8xbf16>
    %8 = arith.extf %7 : vector<8x8x8xbf16> to vector<8x8x8xf32>
    %9 = vector.shape_cast %8 : vector<8x8x8xf32> to vector<64x8xf32>
    %c0_15 = arith.constant 0 : index
    %c0_16 = arith.constant 0 : index
    %c0_17 = arith.constant 0 : index
    %10 = vector.load %arg4[%c0_15, %c0_16, %c0_17] : memref<9x8x8xf32, #tpu.memory_space<vmem>>, vector<1x8x8xf32>
    %11 = vector.shape_cast %10 : vector<1x8x8xf32> to vector<8x8xf32>
    %cst_18 = arith.constant dense<0.000000e+00> : vector<64x8xf32>
    %12 = tpu.matmul %9, %11, %cst_18 {dimension_numbers = #tpu.dot_dimension_numbers<[1], [0], [0], [1], [0, 0, 1, 1], [], []>} : vector<64x8xf32>, vector<8x8xf32>, vector<64x8xf32> -> vector<64x8xf32>
    %13 = arith.addf %6, %12 : vector<64x8xf32>
    %c0_19 = arith.constant 0 : index
    %c1 = arith.constant 1 : index
    %c0_20 = arith.constant 0 : index
    %14 = vector.load %arg7[%c0_19, %c1, %c0_20] : memref<10x10x8xbf16, #tpu.memory_space<vmem>>, vector<8x8x8xbf16>
    %15 = arith.extf %14 : vector<8x8x8xbf16> to vector<8x8x8xf32>
    %16 = vector.shape_cast %15 : vector<8x8x8xf32> to vector<64x8xf32>
    %c1_21 = arith.constant 1 : index
    %c0_22 = arith.constant 0 : index
    %c0_23 = arith.constant 0 : index
    %17 = vector.load %arg4[%c1_21, %c0_22, %c0_23] : memref<9x8x8xf32, #tpu.memory_space<vmem>>, vector<1x8x8xf32>
    %18 = vector.shape_cast %17 : vector<1x8x8xf32> to vector<8x8xf32>
    %cst_24 = arith.constant dense<0.000000e+00> : vector<64x8xf32>
    %19 = tpu.matmul %16, %18, %cst_24 {dimension_numbers = #tpu.dot_dimension_numbers<[1], [0], [0], [1], [0, 0, 1, 1], [], []>} : vector<64x8xf32>, vector<8x8xf32>, vector<64x8xf32> -> vector<64x8xf32>
    %20 = arith.addf %13, %19 : vector<64x8xf32>
    %c0_25 = arith.constant 0 : index
    %c2 = arith.constant 2 : index
    %c0_26 = arith.constant 0 : index
    %21 = vector.load %arg7[%c0_25, %c2, %c0_26] : memref<10x10x8xbf16, #tpu.memory_space<vmem>>, vector<8x8x8xbf16>
    %22 = arith.extf %21 : vector<8x8x8xbf16> to vector<8x8x8xf32>
    %23 = vector.shape_cast %22 : vector<8x8x8xf32> to vector<64x8xf32>
    %c2_27 = arith.constant 2 : index
    %c0_28 = arith.constant 0 : index
    %c0_29 = arith.constant 0 : index
    %24 = vector.load %arg4[%c2_27, %c0_28, %c0_29] : memref<9x8x8xf32, #tpu.memory_space<vmem>>, vector<1x8x8xf32>
    %25 = vector.shape_cast %24 : vector<1x8x8xf32> to vector<8x8xf32>
    %cst_30 = arith.constant dense<0.000000e+00> : vector<64x8xf32>
    %26 = tpu.matmul %23, %25, %cst_30 {dimension_numbers = #tpu.dot_dimension_numbers<[1], [0], [0], [1], [0, 0, 1, 1], [], []>} : vector<64x8xf32>, vector<8x8xf32>, vector<64x8xf32> -> vector<64x8xf32>
    %27 = arith.addf %20, %26 : vector<64x8xf32>
    %c1_31 = arith.constant 1 : index
    %c0_32 = arith.constant 0 : index
    %c0_33 = arith.constant 0 : index
    %28 = vector.load %arg7[%c1_31, %c0_32, %c0_33] : memref<10x10x8xbf16, #tpu.memory_space<vmem>>, vector<8x8x8xbf16>
    %29 = arith.extf %28 : vector<8x8x8xbf16> to vector<8x8x8xf32>
    %30 = vector.shape_cast %29 : vector<8x8x8xf32> to vector<64x8xf32>
    %c3 = arith.constant 3 : index
    %c0_34 = arith.constant 0 : index
    %c0_35 = arith.constant 0 : index
    %31 = vector.load %arg4[%c3, %c0_34, %c0_35] : memref<9x8x8xf32, #tpu.memory_space<vmem>>, vector<1x8x8xf32>
    %32 = vector.shape_cast %31 : vector<1x8x8xf32> to vector<8x8xf32>
    %cst_36 = arith.constant dense<0.000000e+00> : vector<64x8xf32>
    %33 = tpu.matmul %30, %32, %cst_36 {dimension_numbers = #tpu.dot_dimension_numbers<[1], [0], [0], [1], [0, 0, 1, 1], [], []>} : vector<64x8xf32>, vector<8x8xf32>, vector<64x8xf32> -> vector<64x8xf32>
    %34 = arith.addf %27, %33 : vector<64x8xf32>
    %c1_37 = arith.constant 1 : index
    %c1_38 = arith.constant 1 : index
    %c0_39 = arith.constant 0 : index
    %35 = vector.load %arg7[%c1_37, %c1_38, %c0_39] : memref<10x10x8xbf16, #tpu.memory_space<vmem>>, vector<8x8x8xbf16>
    %36 = arith.extf %35 : vector<8x8x8xbf16> to vector<8x8x8xf32>
    %37 = vector.shape_cast %36 : vector<8x8x8xf32> to vector<64x8xf32>
    %c4 = arith.constant 4 : index
    %c0_40 = arith.constant 0 : index
    %c0_41 = arith.constant 0 : index
    %38 = vector.load %arg4[%c4, %c0_40, %c0_41] : memref<9x8x8xf32, #tpu.memory_space<vmem>>, vector<1x8x8xf32>
    %39 = vector.shape_cast %38 : vector<1x8x8xf32> to vector<8x8xf32>
    %cst_42 = arith.constant dense<0.000000e+00> : vector<64x8xf32>
    %40 = tpu.matmul %37, %39, %cst_42 {dimension_numbers = #tpu.dot_dimension_numbers<[1], [0], [0], [1], [0, 0, 1, 1], [], []>} : vector<64x8xf32>, vector<8x8xf32>, vector<64x8xf32> -> vector<64x8xf32>
    %41 = arith.addf %34, %40 : vector<64x8xf32>
    %c1_43 = arith.constant 1 : index
    %c2_44 = arith.constant 2 : index
    %c0_45 = arith.constant 0 : index
    %42 = vector.load %arg7[%c1_43, %c2_44, %c0_45] : memref<10x10x8xbf16, #tpu.memory_space<vmem>>, vector<8x8x8xbf16>
    %43 = arith.extf %42 : vector<8x8x8xbf16> to vector<8x8x8xf32>
    %44 = vector.shape_cast %43 : vector<8x8x8xf32> to vector<64x8xf32>
    %c5 = arith.constant 5 : index
    %c0_46 = arith.constant 0 : index
    %c0_47 = arith.constant 0 : index
    %45 = vector.load %arg4[%c5, %c0_46, %c0_47] : memref<9x8x8xf32, #tpu.memory_space<vmem>>, vector<1x8x8xf32>
    %46 = vector.shape_cast %45 : vector<1x8x8xf32> to vector<8x8xf32>
    %cst_48 = arith.constant dense<0.000000e+00> : vector<64x8xf32>
    %47 = tpu.matmul %44, %46, %cst_48 {dimension_numbers = #tpu.dot_dimension_numbers<[1], [0], [0], [1], [0, 0, 1, 1], [], []>} : vector<64x8xf32>, vector<8x8xf32>, vector<64x8xf32> -> vector<64x8xf32>
    %48 = arith.addf %41, %47 : vector<64x8xf32>
    %c2_49 = arith.constant 2 : index
    %c0_50 = arith.constant 0 : index
    %c0_51 = arith.constant 0 : index
    %49 = vector.load %arg7[%c2_49, %c0_50, %c0_51] : memref<10x10x8xbf16, #tpu.memory_space<vmem>>, vector<8x8x8xbf16>
    %50 = arith.extf %49 : vector<8x8x8xbf16> to vector<8x8x8xf32>
    %51 = vector.shape_cast %50 : vector<8x8x8xf32> to vector<64x8xf32>
    %c6 = arith.constant 6 : index
    %c0_52 = arith.constant 0 : index
    %c0_53 = arith.constant 0 : index
    %52 = vector.load %arg4[%c6, %c0_52, %c0_53] : memref<9x8x8xf32, #tpu.memory_space<vmem>>, vector<1x8x8xf32>
    %53 = vector.shape_cast %52 : vector<1x8x8xf32> to vector<8x8xf32>
    %cst_54 = arith.constant dense<0.000000e+00> : vector<64x8xf32>
    %54 = tpu.matmul %51, %53, %cst_54 {dimension_numbers = #tpu.dot_dimension_numbers<[1], [0], [0], [1], [0, 0, 1, 1], [], []>} : vector<64x8xf32>, vector<8x8xf32>, vector<64x8xf32> -> vector<64x8xf32>
    %55 = arith.addf %48, %54 : vector<64x8xf32>
    %c2_55 = arith.constant 2 : index
    %c1_56 = arith.constant 1 : index
    %c0_57 = arith.constant 0 : index
    %56 = vector.load %arg7[%c2_55, %c1_56, %c0_57] : memref<10x10x8xbf16, #tpu.memory_space<vmem>>, vector<8x8x8xbf16>
    %57 = arith.extf %56 : vector<8x8x8xbf16> to vector<8x8x8xf32>
    %58 = vector.shape_cast %57 : vector<8x8x8xf32> to vector<64x8xf32>
    %c7 = arith.constant 7 : index
    %c0_58 = arith.constant 0 : index
    %c0_59 = arith.constant 0 : index
    %59 = vector.load %arg4[%c7, %c0_58, %c0_59] : memref<9x8x8xf32, #tpu.memory_space<vmem>>, vector<1x8x8xf32>
    %60 = vector.shape_cast %59 : vector<1x8x8xf32> to vector<8x8xf32>
    %cst_60 = arith.constant dense<0.000000e+00> : vector<64x8xf32>
    %61 = tpu.matmul %58, %60, %cst_60 {dimension_numbers = #tpu.dot_dimension_numbers<[1], [0], [0], [1], [0, 0, 1, 1], [], []>} : vector<64x8xf32>, vector<8x8xf32>, vector<64x8xf32> -> vector<64x8xf32>
    %62 = arith.addf %55, %61 : vector<64x8xf32>
    %c2_61 = arith.constant 2 : index
    %c2_62 = arith.constant 2 : index
    %c0_63 = arith.constant 0 : index
    %63 = vector.load %arg7[%c2_61, %c2_62, %c0_63] : memref<10x10x8xbf16, #tpu.memory_space<vmem>>, vector<8x8x8xbf16>
    %64 = arith.extf %63 : vector<8x8x8xbf16> to vector<8x8x8xf32>
    %65 = vector.shape_cast %64 : vector<8x8x8xf32> to vector<64x8xf32>
    %c8_64 = arith.constant 8 : index
    %c0_65 = arith.constant 0 : index
    %c0_66 = arith.constant 0 : index
    %66 = vector.load %arg4[%c8_64, %c0_65, %c0_66] : memref<9x8x8xf32, #tpu.memory_space<vmem>>, vector<1x8x8xf32>
    %67 = vector.shape_cast %66 : vector<1x8x8xf32> to vector<8x8xf32>
    %cst_67 = arith.constant dense<0.000000e+00> : vector<64x8xf32>
    %68 = tpu.matmul %65, %67, %cst_67 {dimension_numbers = #tpu.dot_dimension_numbers<[1], [0], [0], [1], [0, 0, 1, 1], [], []>} : vector<64x8xf32>, vector<8x8xf32>, vector<64x8xf32> -> vector<64x8xf32>
    %69 = arith.addf %62, %68 : vector<64x8xf32>
    %c0_68 = arith.constant 0 : index
    %c0_69 = arith.constant 0 : index
    %70 = vector.load %arg5[%c0_68, %c0_69] : memref<1x8xf32, #tpu.memory_space<vmem>>, vector<1x8xf32>
    %71 = vector.broadcast %70 : vector<1x8xf32> to vector<64x8xf32>
    %72 = arith.addf %69, %71 : vector<64x8xf32>
    %cst_70 = arith.constant 0.000000e+00 : f32
    %73 = vector.broadcast %cst_70 : f32 to vector<64x8xf32>
    %74 = arith.cmpf oge, %72, %73 : vector<64x8xf32>
    %cst_71 = arith.constant 2.000000e-01 : f32
    %75 = vector.broadcast %cst_71 : f32 to vector<64x8xf32>
    %76 = arith.mulf %75, %72 : vector<64x8xf32>
    %77 = arith.select %74, %72, %76 : vector<64x8xi1>, vector<64x8xf32>
    %78 = vector.shape_cast %77 : vector<64x8xf32> to vector<8x8x8xf32>
    %c0_72 = arith.constant 0 : index
    %c0_73 = arith.constant 0 : index
    %c0_74 = arith.constant 0 : index
    %c0_75 = arith.constant 0 : index
    %79 = vector.load %arg6[%c0_72, %c0_73, %c0_74, %c0_75] : memref<1x8x8x8xf32, #tpu.memory_space<vmem>>, vector<1x8x8x8xf32>
    %80 = vector.shape_cast %79 : vector<1x8x8x8xf32> to vector<8x8x8xf32>
    %81 = vector.shape_cast %78 : vector<8x8x8xf32> to vector<1x8x8x8xf32>
    tpu.vector_store %arg6[%c0_72, %c0_73, %c0_74, %c0_75], %81 {strides = array<i32>} : memref<1x8x8x8xf32, #tpu.memory_space<vmem>>, vector<1x8x8x8xf32>,
    return
  }
  func.func @transform_0(%arg0: i32, %arg1: i32) -> (i32, i32, i32, i32) {
    %c0_i32 = arith.constant 0 : i32
    %c0_i32_0 = arith.constant 0 : i32
    %c0_i32_1 = arith.constant 0 : i32
    return %arg0, %arg1, %c0_i32, %c0_i32_0 : i32, i32, i32, i32
  }
  func.func @transform_1(%arg0: i32, %arg1: i32) -> (i32, i32, i32, i32) {
    %c0_i32 = arith.constant 0 : i32
    %c0_i32_0 = arith.constant 0 : i32
    %c0_i32_1 = arith.constant 0 : i32
    return %arg0, %arg1, %c0_i32, %c0_i32_0 : i32, i32, i32, i32
  }
  func.func @transform_2(%arg0: i32, %arg1: i32) -> (i32, i32, i32) {
    %c0_i32 = arith.constant 0 : i32
    %c0_i32_0 = arith.constant 0 : i32
    %c0_i32_1 = arith.constant 0 : i32
    %c0_i32_2 = arith.constant 0 : i32
    return %c0_i32, %c0_i32_0, %c0_i32_1 : i32, i32, i32
  }
  func.func @transform_3(%arg0: i32, %arg1: i32) -> (i32, i32) {
    %c0_i32 = arith.constant 0 : i32
    %c0_i32_0 = arith.constant 0 : i32
    %c0_i32_1 = arith.constant 0 : i32
    return %c0_i32, %c0_i32_0 : i32, i32
  }
  func.func @transform_4(%arg0: i32, %arg1: i32) -> (i32, i32, i32, i32) {
    %c0_i32 = arith.constant 0 : i32
    %c0_i32_0 = arith.constant 0 : i32
    %c0_i32_1 = arith.constant 0 : i32
    return %arg0, %arg1, %c0_i32, %c0_i32_0 : i32, i32, i32, i32
  }
}

</mosaic_0001>

<bundles_post_ra>
// kernel: a_call__.2
= control target key start
LH: loop header
LB: loop body
LE: loop exit
PB: predicated region body
PF: predicated region fallthrough
CT: control target
= control target key end

     0   :  { %s1075_s15 = smov 0   ;;  %s1077_s16 = smov 0   ;;  %s1268_s0 = inlined_call_operand.vmem [shape: bf16[2,9,9,16], index: 0, kind: input, shape index: {}]   ;;  %s1269_s1 = inlined_call_operand.vmem [shape: bf16[2,1,9,16], index: 1, kind: input, shape index: {}]   ;;  %s1270_s2 = inlined_call_operand.vmem [shape: f32[4,16,8], index: 2, kind: input, shape index: {}]   ;;  %s1271_s3 = inlined_call_operand.vmem [shape: f32[1,8], index: 3, kind: input, shape index: {}]   ;;  %s1272_s4 = inlined_call_operand.vmem [shape: bf16[2,8,8,8], index: 4, kind: output, shape index: {}]  }
   0x1   :  { %s1079_s17 = smov 0  }
   0x2 LB: > { %s26_s18 = sadd.s32 1, %s1044_s16  ;;  %p952_p0 = scmp.ge.s32.totalorder %s1048_s17, 1  ;;  %s1048_s17 = sphi %s1079_s17, %s14_s17   ;;  %s1044_s16 = sphi %s1077_s16, %s1276_s16   ;;  %s1040_s15 = sphi %s1075_s15, %s1275_s15  }
   0x3   : > { %p28_p1 = scmp.ge.s32.totalorder %s26_s18, 2  ;;  %p210_p2 = scmp.lt.s32.totalorder %s1048_s17, 3 }
   0x5   : > { %s1278_s18 = smov (%p28_p1, %s26_s18), 0  ;;  %p211_p3 = pnand %p952_p0, %p210_p2 }
   0x6   : > { %p265_p4 = scmp.lt.s32.totalorder (!%p211_p3), %s1040_s15, 1 }
   0x7   : > { %214 = sbr.rel (%p211_p3) target bundleno = 229 (0xe5), region = 36 }
   0xc   : > { %v977_v0 = vld [vmem:[%s1270_s2 + $0x28] sm:$0xff]  ;;  %v976_v1 = vld [vmem:[%s1270_s2 + $0x20] sm:$0xff]  ;;  %v987_v2 = vld [vmem:[%s1270_s2 + $0x38] sm:$0xff]  ;;  %s1280_s15 = smov (!%p265_p4, %s1040_s15), 1  ;;  %vm317_vm0 = vcmask 122880   ;;  %vm315_vm2 = vcmask 125952  }
   0xd   : > { %609 = vmatpush.msra.mxu2 %v977_v0  ;;  %749 = vmatpush.msra.mxu3 %v987_v2  ;;  %v959_v3 = vld [vmem:[%s1270_s2 + $0x18] sm:$0xff]  ;;  %v375_v4 = vld [vmem:[%s1270_s2 + $0x8] sm:$0xff]  ;;  %v986_v5 = vld [vmem:[%s1270_s2 + $0x30] sm:$0xff]  ;;  %vm318_vm1 = vsmask.f32 256  ;;  %s1000_s9 = smul.u32 72, %s1280_s15 }
   0xe   : > { %467 = vmatpush.msra.mxu0 %v959_v3  ;;  %524 = vmatpush.msra.mxu1 %v375_v4  ;;  %v958_v6 = vld [vmem:[%s1270_s2 + $0x10] sm:$0xff]  ;;  %v374_v7 = vld [vmem:[%s1270_s2] sm:$0xff]  ;;  %vm1120_vm3 = vmand %vm317_vm0, %vm318_vm1  ;;  %vm436_vm4 = vcmask 130048   ;;  %vm408_vm5 = vcmask 1046528   ;;  %s998_s13 = sshll.u32 %s1280_s15, 3  ;;  %s999_s23 = sshll.u32 %s1280_s15, 5 }
   0xf   : > { %610 = vmatpush.msra.mxu2 %v976_v1  ;;  %750 = vmatpush.msra.mxu3 %v986_v5  ;;  %v324_v9 = vld [vmem:[#allocation2 + $0xc] sm:$0x1]  ;;  %s1127_s12 = scalar_lea.vmem %s1268_s0, %s1000_s9  ;;  %v320_v10 = vld [vmem:[#allocation2 + $0x4] sm:$0x1]  ;;  %v328_v11 = vld [vmem:[#allocation2 + $0x14] sm:$0x1]  ;;  %s288_s20 = scalar_lea.vmem %s1269_s1, %s998_s13 }
  0x10   : > { %468 = vmatpush.msra.mxu0 %v958_v6  ;;  %525 = vmatpush.msra.mxu1 %v374_v7  ;;  %v301_v12 = vld [vmem:[%s1127_s12 + $0x8] sm:$0xf]  ;;  %v302_v13 = vld [vmem:[%s1127_s12 + $0xc] sm:$0x1]  ;;  %v299_v14 = vld [vmem:[%s1127_s12] sm:$0xf]  ;;  %s1234_s26 = scalar_lea.vmem %s1272_s4, %s999_s23 }
  0x11   : > { %323 = vst.msk [vmem:[#allocation2 + $0x8] sm:$0xf] %vm315_vm2, %v301_v12  ;;  %v325_v15 = vsel %vm1120_vm3, %v302_v13, %v324_v9  ;;  %v300_v16 = vld [vmem:[%s1127_s12 + $0x4] sm:$0x1]  ;;  %v303_v18 = vld [vmem:[%s1127_s12 + $0x10] sm:$0xf] }
  0x12   : > { %326 = vst [vmem:[#allocation2 + $0xc] sm:$0x1] %v325_v15  ;;  %v321_v17 = vsel %vm1120_vm3, %v300_v16, %v320_v10  ;;  %v304_v19 = vld [vmem:[%s1127_s12 + $0x14] sm:$0x1]  ;;  %v306_v21 = vld [vmem:[%s1127_s12 + $0x1c] sm:$0x1] }
  0x13   : > { %316 = vst.msk [vmem:[#allocation2] sm:$0xf] %vm315_vm2, %v299_v14  ;;  %v329_v20 = vsel %vm1120_vm3, %v304_v19, %v328_v11  ;;  %v332_v22 = vld [vmem:[#allocation2 + $0x1c] sm:$0x1]  ;;  %v305_v23 = vld [vmem:[%s1127_s12 + $0x18] sm:$0xf] }
  0x14   : > { %322 = vst [vmem:[#allocation2 + $0x4] sm:$0x1] %v321_v17  ;;  %v308_v24 = vld [vmem:[%s1127_s12 + $0x24] sm:$0x1]  ;;  %v333_v26 = vsel %vm1120_vm3, %v306_v21, %v332_v22  ;;  %v307_v27 = vld [vmem:[%s1127_s12 + $0x20] sm:$0xf] }
  0x15   : > { %327 = vst.msk [vmem:[#allocation2 + $0x10] sm:$0xf] %vm315_vm2, %v303_v18  ;;  %v336_v25 = vld [vmem:[#allocation2 + $0x24] sm:$0x1]  ;;  %v310_v41 = vld [vmem:[%s1127_s12 + $0x2c] sm:$0x1] }
  0x16   : > { %330 = vst [vmem:[#allocation2 + $0x14] sm:$0x1] %v329_v20  ;;  %v337_v30 = vsel %vm1120_vm3, %v308_v24, %v336_v25  ;;  %v340_v50 = vld [vmem:[#allocation2 + $0x2c] sm:$0x1]  ;;  %v309_v56 = vld [vmem:[%s1127_s12 + $0x28] sm:$0xf] }
  0x17   : > { %331 = vst.msk [vmem:[#allocation2 + $0x18] sm:$0xf] %vm315_vm2, %v305_v23  ;;  %v341_v60 = vsel %vm1120_vm3, %v310_v41, %v340_v50  ;;  %v311_v1 = vld [vmem:[%s1127_s12 + $0x30] sm:$0xf]  ;;  %v312_v9 = vld [vmem:[%s1127_s12 + $0x34] sm:$0x1] }
  0x18   : > { %v552_v28 = vld [vmem:[#allocation2 + $0x8] sm:$0xf]  ;;  %334 = vst [vmem:[#allocation2 + $0x1c] sm:$0x1] %v333_v26  ;;  %v344_v13 = vld [vmem:[#allocation2 + $0x34] sm:$0x1] }
  0x19   : > { %v644_v29 = vld [vmem:[#allocation2 + $0x8] sm:$0xf]  ;;  %v560_v31 = vunpack.c.l.bf16 %v552_v28  ;;  %v645_v32 = vld [vmem:[#allocation2 + $0xc] sm:$0x1]  ;;  %335 = vst.msk [vmem:[#allocation2 + $0x20] sm:$0xf] %vm315_vm2, %v307_v27  ;;  %v345_v17 = vsel %vm1120_vm3, %v312_v9, %v344_v13 }
  0x1a   : > { %v660_v33 = vunpack.c.l.bf16 %v644_v29  ;;  %v359_v34 = vld [vmem:[#allocation2 + $0x8] sm:$0xf]  ;;  %v661_v35 = vunpack.c.l.bf16 %v645_v32  ;;  %v358_v36 = vld [vmem:[#allocation2] sm:$0xf]  ;;  %v377_v37 = vld [vmem:[#allocation2 + $0xc] sm:$0x1] }
  0x1b   : > { %978 = vmatmul.msk.f32.vlgmr.msra.gmra.mxu2 %vm436_vm4, %v560_v31  ;;  %v366_v39 = vunpack.c.l.bf16 %v358_v36  ;;  %v376_v40 = vld [vmem:[#allocation2 + $0x4] sm:$0x1]  ;;  %338 = vst [vmem:[#allocation2 + $0x24] sm:$0x1] %v337_v30  ;;  %v367_v49 = vunpack.c.l.bf16 %v359_v34  ;;  %v385_v54 = vunpack.c.l.bf16 %v377_v37  ;;  %v313_v14 = vld [vmem:[%s1127_s12 + $0x38] sm:$0xf] }
  0x1c   : > { %v692_v38 = vrot.slane %v660_v33, 1  ;;  %v693_v42 = vrot.slane %v661_v35, 1  ;;  %v384_v43 = vunpack.c.l.bf16 %v376_v40  ;;  %v553_v44 = vld [vmem:[#allocation2 + $0x10] sm:$0xf]  ;;  %339 = vst.msk [vmem:[#allocation2 + $0x28] sm:$0xf] %vm315_vm2, %v309_v56 }
  0x1d   : > { %v646_v45 = vld [vmem:[#allocation2 + $0x10] sm:$0xf]  ;;  %v409_v46 = vrot.slane %v366_v39, 1  ;;  %968 = vmatmul.msk.f32.vlgmr.msra.gmra.mxu1 %vm436_vm4, %v366_v39  ;;  %v647_v47 = vld [vmem:[#allocation2 + $0x14] sm:$0x1]  ;;  %v561_v55 = vunpack.c.l.bf16 %v553_v44  ;;  %v412_v63 = vrot.slane %v367_v49, 1 }
  0x1e   : > { %v662_v48 = vunpack.c.l.bf16 %v646_v45  ;;  %v694_v51 = vsel %vm408_vm5, %v692_v38, %v693_v42  ;;  %v410_v52 = vrot.slane %v384_v43, 1  ;;  %v663_v53 = vunpack.c.l.bf16 %v647_v47  ;;  %v648_v61 = vld [vmem:[#allocation2 + $0x18] sm:$0xf]  ;;  %v360_v2 = vld [vmem:[#allocation2 + $0x10] sm:$0xf] }
  0x1f   : > { %988 = vmatmul.msk.f32.vlgmr.msra.gmra.mxu3 %vm436_vm4, %v694_v51  ;;  %v649_v62 = vld [vmem:[#allocation2 + $0x1c] sm:$0x1]  ;;  %v413_v0 = vrot.slane %v385_v54, 1  ;;  %v378_v3 = vld [vmem:[#allocation2 + $0x14] sm:$0x1]  ;;  %v664_v6 = vunpack.c.l.bf16 %v648_v61  ;;  %v368_v11 = vunpack.c.l.bf16 %v360_v2  ;;  %vm828_vm7 = vcmask 60416  }
  0x20   : > { %v411_v57 = vsel %vm408_vm5, %v409_v46, %v410_v52  ;;  %v695_v58 = vrot.slane %v662_v48, 1  ;;  %v696_v59 = vrot.slane %v663_v53, 1  ;;  %342 = vst [vmem:[#allocation2 + $0x2c] sm:$0x1] %v341_v60  ;;  %v554_v5 = vld [vmem:[#allocation2 + $0x18] sm:$0xf]  ;;  %v665_v7 = vunpack.c.l.bf16 %v649_v62 }
  0x21   : > { %960 = vmatmul.msk.f32.vlgmr.msra.gmra.mxu0 %vm436_vm4, %v411_v57  ;;  %343 = vst.msk [vmem:[#allocation2 + $0x30] sm:$0xf] %vm315_vm2, %v311_v1  ;;  %v414_v10 = vsel %vm408_vm5, %v412_v63, %v413_v0  ;;  %v386_v12 = vunpack.c.l.bf16 %v378_v3  ;;  %v314_v15 = vld [vmem:[%s1127_s12 + $0x3c] sm:$0x1]  ;;  %v562_v16 = vunpack.c.l.bf16 %v554_v5  ;;  %v698_v19 = vrot.slane %v664_v6, 1 }
  0x22   : > { %v697_v4 = vsel %vm408_vm5, %v695_v58, %v696_v59  ;;  %347 = vst.msk [vmem:[#allocation2 + $0x38] sm:$0xf] %vm315_vm2, %v313_v14  ;;  %v348_v18 = vld [vmem:[#allocation2 + $0x3c] sm:$0x1]  ;;  %v699_v20 = vrot.slane %v665_v7, 1  ;;  %v415_v25 = vrot.slane %v368_v11, 1 }
  0x23   : > { %979 = vmatmul.msk.f32.gmra.mxu2 %vm436_vm4, %v561_v55  ;;  %346 = vst [vmem:[#allocation2 + $0x34] sm:$0x1] %v345_v17  ;;  %v349_v21 = vsel %vm1120_vm3, %v314_v15, %v348_v18  ;;  %v650_v22 = vld [vmem:[#allocation2 + $0x20] sm:$0xf]  ;;  %v651_v23 = vld [vmem:[#allocation2 + $0x24] sm:$0x1] }
  0x24   : > { %v352_v24 = vld [vmem:[%s288_s20 + $0x4] sm:$0x1]  ;;  %v416_v26 = vrot.slane %v386_v12, 1  ;;  %v361_v27 = vld [vmem:[#allocation2 + $0x18] sm:$0xf]  ;;  %v700_v31 = vsel %vm408_vm5, %v698_v19, %v699_v20  ;;  %v666_v33 = vunpack.c.l.bf16 %v650_v22  ;;  %v667_v34 = vunpack.c.l.bf16 %v651_v23 }
  0x25   : > { %969 = vmatmul.msk.f32.gmra.mxu1 %vm436_vm4, %v367_v49  ;;  %350 = vst [vmem:[#allocation2 + $0x3c] sm:$0x1] %v349_v21  ;;  %v379_v28 = vld [vmem:[#allocation2 + $0x1c] sm:$0x1]  ;;  %v351_v29 = vld [vmem:[%s288_s20] sm:$0xf]  ;;  %v369_v37 = vunpack.c.l.bf16 %v361_v27 }
  0x26   : > { %v355_v30 = vld [vmem:[#allocation2 + $0x44] sm:$0x1]  ;;  %v555_v32 = vld [vmem:[#allocation2 + $0x20] sm:$0xf]  ;;  %354 = vst.msk [vmem:[#allocation2 + $0x40] sm:$0xf] %vm315_vm2, %v351_v29  ;;  %v417_v36 = vsel %vm408_vm5, %v415_v25, %v416_v26  ;;  %v387_v38 = vunpack.c.l.bf16 %v379_v28 }
  0x27   : > { %989 = vmatmul.msk.f32.gmra.mxu3 %vm436_vm4, %v697_v4  ;;  %v356_v35 = vsel %vm1120_vm3, %v352_v24, %v355_v30  ;;  %v563_v39 = vunpack.c.l.bf16 %v555_v32  ;;  %v701_v40 = vrot.slane %v666_v33, 1  ;;  %v702_v41 = vrot.slane %v667_v34, 1  ;;  %v652_v42 = vld [vmem:[#allocation2 + $0x28] sm:$0xf]  ;;  %v653_v43 = vld [vmem:[#allocation2 + $0x2c] sm:$0x1] }
  0x28   : > { %357 = vst [vmem:[#allocation2 + $0x44] sm:$0x1] %v356_v35  ;;  %v418_v8 = vrot.slane %v369_v37, 1  ;;  %v419_v44 = vrot.slane %v387_v38, 1  ;;  %v362_v45 = vld [vmem:[#allocation2 + $0x20] sm:$0xf]  ;;  %v668_v49 = vunpack.c.l.bf16 %v652_v42  ;;  %v669_v50 = vunpack.c.l.bf16 %v653_v43 }
  0x29   : > { %961 = vmatmul.msk.f32.gmra.mxu0 %vm436_vm4, %v414_v10  ;;  %v380_v46 = vld [vmem:[#allocation2 + $0x24] sm:$0x1]  ;;  %v703_v47 = vsel %vm408_vm5, %v701_v40, %v702_v41  ;;  %v556_v48 = vld [vmem:[#allocation2 + $0x28] sm:$0xf]  ;;  %v370_v52 = vunpack.c.l.bf16 %v362_v45  ;;  %v654_v57 = vld [vmem:[#allocation2 + $0x30] sm:$0xf] }
  0x2a   : > { %v420_v51 = vsel %vm408_vm5, %v418_v8, %v419_v44  ;;  %v388_v53 = vunpack.c.l.bf16 %v380_v46  ;;  %v564_v54 = vunpack.c.l.bf16 %v556_v48  ;;  %v704_v55 = vrot.slane %v668_v49, 1  ;;  %v655_v58 = vld [vmem:[#allocation2 + $0x34] sm:$0x1]  ;;  %v363_v61 = vld [vmem:[#allocation2 + $0x28] sm:$0xf] }
  0x2b   : > { %980 = vmatmul.msk.f32.gmra.mxu2 %vm436_vm4, %v562_v16  ;;  %v705_v56 = vrot.slane %v669_v50, 1  ;;  %v421_v59 = vrot.slane %v370_v52, 1  ;;  %v381_v62 = vld [vmem:[#allocation2 + $0x2c] sm:$0x1]  ;;  %v557_v0 = vld [vmem:[#allocation2 + $0x30] sm:$0xf]  ;;  %v670_v1 = vunpack.c.l.bf16 %v654_v57  ;;  %v671_v2 = vunpack.c.l.bf16 %v655_v58 }
  0x2c   : > { %v422_v60 = vrot.slane %v388_v53, 1  ;;  %v371_v4 = vunpack.c.l.bf16 %v363_v61  ;;  %v389_v5 = vunpack.c.l.bf16 %v381_v62  ;;  %v565_v6 = vunpack.c.l.bf16 %v557_v0  ;;  %v656_v10 = vld [vmem:[#allocation2 + $0x38] sm:$0xf]  ;;  %v364_v14 = vld [vmem:[#allocation2 + $0x30] sm:$0xf] }
  0x2d   : > { %970 = vmatmul.msk.f32.gmra.mxu1 %vm436_vm4, %v368_v11  ;;  %v706_v63 = vsel %vm408_vm5, %v704_v55, %v705_v56  ;;  %v707_v7 = vrot.slane %v670_v1, 1  ;;  %v708_v9 = vrot.slane %v671_v2, 1  ;;  %v657_v11 = vld [vmem:[#allocation2 + $0x3c] sm:$0x1]  ;;  %v382_v15 = vld [vmem:[#allocation2 + $0x34] sm:$0x1]  ;;  %v672_v18 = vunpack.c.l.bf16 %v656_v10 }
  0x2e   : > { %v423_v3 = vsel %vm408_vm5, %v421_v59, %v422_v60  ;;  %v424_v12 = vrot.slane %v371_v4, 1  ;;  %v425_v13 = vrot.slane %v389_v5, 1  ;;  %v558_v17 = vld [vmem:[#allocation2 + $0x38] sm:$0xf]  ;;  %v673_v19 = vunpack.c.l.bf16 %v657_v11  ;;  %v658_v26 = vld [vmem:[#allocation2 + $0x40] sm:$0xf] }
  0x2f   : > { %990 = vmatmul.msk.f32.gmra.mxu3 %vm436_vm4, %v700_v31  ;;  %v709_v16 = vsel %vm408_vm5, %v707_v7, %v708_v9  ;;  %v372_v21 = vunpack.c.l.bf16 %v364_v14  ;;  %v390_v22 = vunpack.c.l.bf16 %v382_v15  ;;  %v566_v23 = vunpack.c.l.bf16 %v558_v17  ;;  %v659_v27 = vld [vmem:[#allocation2 + $0x44] sm:$0x1]  ;;  %v365_v30 = vld [vmem:[#allocation2 + $0x38] sm:$0xf]  ;;  %v383_v31 = vld [vmem:[#allocation2 + $0x3c] sm:$0x1] }
  0x30   : > { %v426_v20 = vsel %vm408_vm5, %v424_v12, %v425_v13  ;;  %v710_v24 = vrot.slane %v672_v18, 1  ;;  %v711_v25 = vrot.slane %v673_v19, 1  ;;  %v559_v33 = vld [vmem:[#allocation2 + $0x40] sm:$0xf]  ;;  %v674_v34 = vunpack.c.l.bf16 %v658_v26 }
  0x31   : > { %962 = vmatmul.msk.f32.gmra.mxu0 %vm436_vm4, %v417_v36  ;;  %v427_v28 = vrot.slane %v372_v21, 1  ;;  %v428_v29 = vrot.slane %v390_v22, 1  ;;  %v675_v35 = vunpack.c.l.bf16 %v659_v27  ;;  %v391_v38 = vunpack.c.l.bf16 %v383_v31  ;;  %v1227_v50 = vld [vmem:[%s1271_s3] ss:$0 sm:$0xff] }
  0x32   : > { %v712_v32 = vsel %vm408_vm5, %v710_v24, %v711_v25  ;;  %v713_v40 = vrot.slane %v674_v34, 1 }
  0x33   : > { %981 = vmatmul.msk.f32.gmra.mxu2 %vm436_vm4, %v563_v39  ;;  %v429_v36 = vsel %vm408_vm5, %v427_v28, %v428_v29  ;;  %v567_v39 = vunpack.c.l.bf16 %v559_v33  ;;  %v714_v41 = vrot.slane %v675_v35, 1  ;;  %v431_v43 = vrot.slane %v391_v38, 1 }
  0x35   : > { %971 = vmatmul.msk.f32.gmra.mxu1 %vm436_vm4, %v369_v37  ;;  %v373_v37 = vunpack.c.l.bf16 %v365_v30  ;;  %v715_v8 = vsel %vm408_vm5, %v713_v40, %v714_v41 }
  0x37   : > { %991 = vmatmul.msk.f32.gmra.mxu3 %vm436_vm4, %v703_v47  ;;  %v430_v42 = vrot.slane %v373_v37, 1 }
  0x39   : > { %963 = vmatmul.msk.f32.gmra.mxu0 %vm436_vm4, %v420_v51  ;;  %v432_v44 = vsel %vm408_vm5, %v430_v42, %v431_v43 }
  0x3b   : > { %982 = vmatmul.msk.f32.gmra.mxu2 %vm436_vm4, %v564_v54 }
  0x3d   : > { %972 = vmatmul.msk.f32.gmra.mxu1 %vm436_vm4, %v370_v52 }
  0x3f   : > { %992 = vmatmul.msk.f32.gmra.mxu3 %vm436_vm4, %v706_v63 }
  0x41   : > { %964 = vmatmul.msk.f32.gmra.mxu0 %vm436_vm4, %v423_v3 }
  0x43   : > { %983 = vmatmul.msk.f32.gmra.mxu2 %vm436_vm4, %v565_v6 }
  0x45   : > { %973 = vmatmul.msk.f32.gmra.mxu1 %vm436_vm4, %v371_v4 }
  0x47   : > { %993 = vmatmul.msk.f32.gmra.mxu3 %vm436_vm4, %v709_v16 }
  0x49   : > { %965 = vmatmul.msk.f32.gmra.mxu0 %vm436_vm4, %v426_v20 }
  0x4b   : > { %984 = vmatmul.msk.f32.gmra.mxu2 %vm436_vm4, %v566_v23 }
  0x4d   : > { %974 = vmatmul.msk.f32.gmra.mxu1 %vm436_vm4, %v372_v21 }
  0x4f   : > { %994 = vmatmul.msk.f32.gmra.mxu3 %vm436_vm4, %v712_v32 }
  0x51   : > { %966 = vmatmul.msk.f32.gmra.mxu0 %vm436_vm4, %v429_v36 }
  0x53   : > { %985 = vmatmul.msk.f32.gmra.mxu2 %vm436_vm4, %v567_v39 }
  0x55   : > { %975 = vmatmul.msk.f32.gmra.mxu1 %vm436_vm4, %v373_v37 }
  0x57   : > { %995 = vmatmul.msk.f32.gmra.mxu3 %vm436_vm4, %v715_v8 }
  0x59   : > { %967 = vmatmul.msk.f32.gmra.mxu0 %vm436_vm4, %v432_v44 }
  0x9a   : > { %v527_v45 = vpop.f32.mrf.mxu1 }
  0x9e   : > { %v470_v46 = vpop.f32.mrf.mxu0  ;;  %v612_v47 = vpop.f32.mrf.mxu2 }
  0x9f   : > { %v528_v48 = vadd.f32 %v527_v45, %v470_v46 }
  0xa1   : > { %v636_v49 = vadd.f32 %v612_v47, %v528_v48 }
  0xa2   : > { %v752_v51 = vpop.f32.mrf.mxu3  ;;  %v530_v52 = vpop.f32.mrf.mxu1 }
  0xa3   : > { %v776_v53 = vadd.f32 %v752_v51, %v636_v49 }
  0xa5   : > { %v788_v54 = vadd.f32 %v1227_v50, %v776_v53 }
  0xa6   : > { %v473_v55 = vpop.f32.mrf.mxu0  ;;  %v615_v56 = vpop.f32.mrf.mxu2 }
  0xa7   : > { %vm796_vm6 = vcmp.ge.f32.partialorder %v788_v54, 0.0  ;;  %v804_v57 = vmul.f32 0.2, %v788_v54  ;;  %v531_v58 = vadd.f32 %v530_v52, %v473_v55 }
  0xa9   : > { %v812_v59 = vsel %vm796_vm6, %v788_v54, %v804_v57  ;;  %v637_v60 = vadd.f32 %v615_v56, %v531_v58 }
  0xaa   : > { %v820_v61 = vpack.c.bf16 %v812_v59, %v812_v59  ;;  %v755_v62 = vpop.f32.mrf.mxu3  ;;  %v533_v63 = vpop.f32.mrf.mxu1 }
  0xab   : > { %v777_v0 = vadd.f32 %v755_v62, %v637_v60 }
  0xac   : > { %829 = vst.msk [vmem:[%s1234_s26] sm:$0xf] %vm828_vm7, %v820_v61 }
  0xad   : > { %v789_v1 = vadd.f32 %v1227_v50, %v777_v0 }
  0xae   : > { %v476_v2 = vpop.f32.mrf.mxu0  ;;  %v618_v3 = vpop.f32.mrf.mxu2 }
  0xaf   : > { %vm797_vm8 = vcmp.ge.f32.partialorder %v789_v1, 0.0  ;;  %v805_v4 = vmul.f32 0.2, %v789_v1  ;;  %v534_v5 = vadd.f32 %v533_v63, %v476_v2 }
  0xb1   : > { %v813_v6 = vsel %vm797_vm8, %v789_v1, %v805_v4  ;;  %v638_v7 = vadd.f32 %v618_v3, %v534_v5 }
  0xb2   : > { %v821_v9 = vpack.c.bf16 %v813_v6, %v813_v6  ;;  %v758_v10 = vpop.f32.mrf.mxu3  ;;  %v536_v11 = vpop.f32.mrf.mxu1 }
  0xb3   : > { %v778_v12 = vadd.f32 %v758_v10, %v638_v7 }
  0xb4   : > { %830 = vst.msk [vmem:[%s1234_s26 + $0x4] sm:$0xf] %vm828_vm7, %v821_v9 }
  0xb5   : > { %v790_v13 = vadd.f32 %v1227_v50, %v778_v12 }
  0xb6   : > { %v479_v14 = vpop.f32.mrf.mxu0  ;;  %v621_v15 = vpop.f32.mrf.mxu2 }
  0xb7   : > { %vm798_vm9 = vcmp.ge.f32.partialorder %v790_v13, 0.0  ;;  %v806_v16 = vmul.f32 0.2, %v790_v13  ;;  %v537_v17 = vadd.f32 %v536_v11, %v479_v14 }
  0xb9   : > { %v814_v18 = vsel %vm798_vm9, %v790_v13, %v806_v16  ;;  %v639_v19 = vadd.f32 %v621_v15, %v537_v17 }
  0xba   : > { %v822_v20 = vpack.c.bf16 %v814_v18, %v814_v18  ;;  %v761_v21 = vpop.f32.mrf.mxu3  ;;  %v539_v22 = vpop.f32.mrf.mxu1 }
  0xbb   : > { %v779_v23 = vadd.f32 %v761_v21, %v639_v19 }
  0xbc   : > { %831 = vst.msk [vmem:[%s1234_s26 + $0x8] sm:$0xf] %vm828_vm7, %v822_v20 }
  0xbd   : > { %v791_v24 = vadd.f32 %v1227_v50, %v779_v23 }
  0xbe   : > { %v482_v25 = vpop.f32.mrf.mxu0  ;;  %v624_v26 = vpop.f32.mrf.mxu2 }
  0xbf   : > { %vm799_vm10 = vcmp.ge.f32.partialorder %v791_v24, 0.0  ;;  %v807_v27 = vmul.f32 0.2, %v791_v24  ;;  %v540_v28 = vadd.f32 %v539_v22, %v482_v25 }
  0xc1   : > { %v815_v29 = vsel %vm799_vm10, %v791_v24, %v807_v27  ;;  %v640_v30 = vadd.f32 %v624_v26, %v540_v28 }
  0xc2   : > { %v823_v31 = vpack.c.bf16 %v815_v29, %v815_v29  ;;  %v764_v32 = vpop.f32.mrf.mxu3  ;;  %v542_v33 = vpop.f32.mrf.mxu1 }
  0xc3   : > { %v780_v34 = vadd.f32 %v764_v32, %v640_v30 }
  0xc4   : > { %832 = vst.msk [vmem:[%s1234_s26 + $0xc] sm:$0xf] %vm828_vm7, %v823_v31 }
  0xc5   : > { %v792_v35 = vadd.f32 %v1227_v50, %v780_v34 }
  0xc6   : > { %v485_v36 = vpop.f32.mrf.mxu0  ;;  %v627_v37 = vpop.f32.mrf.mxu2 }
  0xc7   : > { %vm800_vm11 = vcmp.ge.f32.partialorder %v792_v35, 0.0  ;;  %v808_v38 = vmul.f32 0.2, %v792_v35  ;;  %v543_v39 = vadd.f32 %v542_v33, %v485_v36 }
  0xc9   : > { %v816_v40 = vsel %vm800_vm11, %v792_v35, %v808_v38  ;;  %v641_v41 = vadd.f32 %v627_v37, %v543_v39 }
  0xca   : > { %v824_v42 = vpack.c.bf16 %v816_v40, %v816_v40  ;;  %v767_v43 = vpop.f32.mrf.mxu3  ;;  %v545_v8 = vpop.f32.mrf.mxu1 }
  0xcb   : > { %v781_v44 = vadd.f32 %v767_v43, %v641_v41 }
  0xcc   : > { %833 = vst.msk [vmem:[%s1234_s26 + $0x10] sm:$0xf] %vm828_vm7, %v824_v42 }
  0xcd   : > { %v793_v45 = vadd.f32 %v1227_v50, %v781_v44 }
  0xce   : > { %v488_v46 = vpop.f32.mrf.mxu0  ;;  %v630_v47 = vpop.f32.mrf.mxu2 }
  0xcf   : > { %vm801_vm12 = vcmp.ge.f32.partialorder %v793_v45, 0.0  ;;  %v809_v48 = vmul.f32 0.2, %v793_v45  ;;  %v546_v49 = vadd.f32 %v545_v8, %v488_v46 }
  0xd1   : > { %v817_v51 = vsel %vm801_vm12, %v793_v45, %v809_v48  ;;  %v642_v52 = vadd.f32 %v630_v47, %v546_v49 }
  0xd2   : > { %v825_v53 = vpack.c.bf16 %v817_v51, %v817_v51  ;;  %v770_v54 = vpop.f32.mrf.mxu3  ;;  %v548_v56 = vpop.f32.mrf.mxu1 }
  0xd3   : > { %v782_v55 = vadd.f32 %v770_v54, %v642_v52 }
  0xd4   : > { %834 = vst.msk [vmem:[%s1234_s26 + $0x14] sm:$0xf] %vm828_vm7, %v825_v53 }
  0xd5   : > { %v794_v57 = vadd.f32 %v1227_v50, %v782_v55 }
  0xd6   : > { %v491_v58 = vpop.f32.mrf.mxu0  ;;  %v633_v59 = vpop.f32.mrf.mxu2 }
  0xd7   : > { %vm802_vm13 = vcmp.ge.f32.partialorder %v794_v57, 0.0  ;;  %v810_v60 = vmul.f32 0.2, %v794_v57  ;;  %v549_v61 = vadd.f32 %v548_v56, %v491_v58 }
  0xd9   : > { %v818_v62 = vsel %vm802_vm13, %v794_v57, %v810_v60  ;;  %v643_v63 = vadd.f32 %v633_v59, %v549_v61 }
  0xda   : > { %v826_v0 = vpack.c.bf16 %v818_v62, %v818_v62  ;;  %v773_v1 = vpop.f32.mrf.mxu3 }
  0xdb   : > { %v783_v2 = vadd.f32 %v773_v1, %v643_v63 }
  0xdc   : > { %835 = vst.msk [vmem:[%s1234_s26 + $0x18] sm:$0xf] %vm828_vm7, %v826_v0 }
  0xdd   : > { %v795_v3 = vadd.f32 %v1227_v50, %v783_v2 }
  0xdf   : > { %vm803_vm14 = vcmp.ge.f32.partialorder %v795_v3, 0.0  ;;  %v811_v4 = vmul.f32 0.2, %v795_v3 }
  0xe1   : > { %v819_v5 = vsel %vm803_vm14, %v795_v3, %v811_v4 }
  0xe2   : > { %v827_v6 = vpack.c.bf16 %v819_v5, %v819_v5 }
  0xe4   : > { %836 = vst.msk [vmem:[%s1234_s26 + $0x1c] sm:$0xf] %vm828_vm7, %v827_v6 }
  0xe5 PF: > { %s14_s17 = sadd.s32 1, %s1048_s17   ;;  %s1275_s15 = smov %s1044_s16 }
  0xe6   : > { %p11_p5 = scmp.ge.s32.totalorder %s14_s17, 4   ;;  %s1276_s16 = smov %s1278_s18 }
  0xe8   :  { %13 = sbr.rel (!%p11_p5) target bundleno = 2 (0x2), region = 74 }

// kernel: a_call__.3
= control target key start
LH: loop header
LB: loop body
LE: loop exit
PB: predicated region body
PF: predicated region fallthrough
CT: control target
= control target key end

     0   :  { %s1673_s15 = smov 0   ;;  %s1675_s16 = smov 0   ;;  %s2145_s0 = inlined_call_operand.vmem [shape: bf16[2,10,10,8], index: 0, kind: input, shape index: {}]   ;;  %s2146_s1 = inlined_call_operand.vmem [shape: bf16[2,2,10,8], index: 1, kind: input, shape index: {}]   ;;  %s2147_s2 = inlined_call_operand.vmem [shape: f32[9,8,8], index: 2, kind: input, shape index: {}]   ;;  %s2148_s3 = inlined_call_operand.vmem [shape: f32[1,8], index: 3, kind: input, shape index: {}]   ;;  %s2149_s4 = inlined_call_operand.vmem [shape: f32[2,8,8,8], index: 4, kind: output, shape index: {}]  }
   0x1   :  { %s1677_s17 = smov 0  }
   0x2 LB: > { %s26_s18 = sadd.s32 1, %s1642_s16  ;;  %p1505_p0 = scmp.ge.s32.totalorder %s1646_s17, 1  ;;  %s1646_s17 = sphi %s1677_s17, %s14_s17   ;;  %s1642_s16 = sphi %s1675_s16, %s2151_s16   ;;  %s1638_s15 = sphi %s1673_s15, %s2150_s15  }
   0x3   : > { %p28_p1 = scmp.ge.s32.totalorder %s26_s18, 2  ;;  %p212_p2 = scmp.lt.s32.totalorder %s1646_s17, 3 }
   0x5   : > { %s2153_s18 = smov (%p28_p1, %s26_s18), 0  ;;  %p213_p3 = pnand %p1505_p0, %p212_p2 }
   0x6   : > { %p268_p4 = scmp.lt.s32.totalorder (!%p213_p3), %s1638_s15, 1 }
   0x7   : > { %216 = sbr.rel (%p213_p3) target bundleno = 313 (0x139), region = 36 }
   0xc   : > { %v1511_v0 = vld [vmem:[%s2147_s2 + $0x8] sm:$0xff]  ;;  %v1528_v1 = vld [vmem:[%s2147_s2 + $0x10] sm:$0xff]  ;;  %v1537_v2 = vld [vmem:[%s2147_s2 + $0x18] sm:$0xff]  ;;  %s2155_s15 = smov (!%p268_p4, %s1638_s15), 1  ;;  %vm320_vm0 = vcmask 60416   ;;  %vm322_vm1 = vcmask 57344  }
   0xd   : > { %1595 = vmatpush.msra.mxu1 %v1511_v0  ;;  %1596 = vmatpush.msra.mxu2 %v1511_v0  ;;  %v363_v3 = vld [vmem:[%s2147_s2] sm:$0xff]  ;;  %s1598_s29 = smul.u32 80, %s2155_s15  ;;  %vm396_vm2 = vcmask 1046528   ;;  %vm423_vm3 = vcmask 64512   ;;  %v1555_v35 = vld [vmem:[%s2147_s2 + $0x28] sm:$0xff]  ;;  %v1564_v43 = vld [vmem:[%s2147_s2 + $0x30] sm:$0xff] }
   0xe   : > { %1597 = vmatpush.msra.mxu3 %v1511_v0  ;;  %v1546_v4 = vld [vmem:[%s2147_s2 + $0x20] sm:$0xff]  ;;  %455 = vmatpush.msra.mxu0 %v1511_v0  ;;  %v1573_v51 = vld [vmem:[%s2147_s2 + $0x38] sm:$0xff]  ;;  %vm562_vm4 = vcmask 1045504   ;;  %s1593_s19 = sshll.u32 %s2155_s15, 4  ;;  %s1594_s25 = sshll.u32 %s2155_s15, 6 }
   0xf   : > { %620 = vmatpush.msrb.mxu2 %v1528_v1  ;;  %512 = vmatpush.msrb.mxu1 %v363_v3  ;;  %s1712_s6 = scalar_lea.vmem %s2145_s0, %s1598_s29  ;;  %s1863_s22 = scalar_lea.vmem %s2146_s1, %s1593_s19 }
  0x10   : > { %712 = vmatpush.msrb.mxu3 %v1537_v2  ;;  %851 = vmatpush.msrb.mxu0 %v1546_v4  ;;  %v308_v5 = vld [vmem:[%s1712_s6 + $0x10] sm:$0xf]  ;;  %v309_v6 = vld [vmem:[%s1712_s6 + $0x14] sm:$0x1]  ;;  %v312_v7 = vld [vmem:[%s1712_s6 + $0x20] sm:$0xf]  ;;  %s2089_s28 = scalar_lea.vmem %s2149_s4, %s1594_s25 }
  0x11   : > { %326 = vst.msk [vmem:[#allocation2 + $0x10] sm:$0xf] %vm320_vm0, %v308_v5  ;;  %v313_v8 = vld [vmem:[%s1712_s6 + $0x24] sm:$0x1]  ;;  %v316_v9 = vld [vmem:[%s1712_s6 + $0x30] sm:$0xf] }
  0x12   : > { %327 = vst.msk [vmem:[#allocation2 + $0x14] sm:$0x1] %vm322_vm1, %v309_v6  ;;  %v317_v10 = vld [vmem:[%s1712_s6 + $0x34] sm:$0x1]  ;;  %v310_v11 = vld [vmem:[%s1712_s6 + $0x18] sm:$0xf] }
  0x13   : > { %330 = vst.msk [vmem:[#allocation2 + $0x20] sm:$0xf] %vm320_vm0, %v312_v7  ;;  %v311_v12 = vld [vmem:[%s1712_s6 + $0x1c] sm:$0x1]  ;;  %v314_v13 = vld [vmem:[%s1712_s6 + $0x28] sm:$0xf] }
  0x14   : > { %331 = vst.msk [vmem:[#allocation2 + $0x24] sm:$0x1] %vm322_vm1, %v313_v8  ;;  %v315_v14 = vld [vmem:[%s1712_s6 + $0x2c] sm:$0x1]  ;;  %v304_v15 = vld [vmem:[%s1712_s6] sm:$0xf] }
  0x15   : > { %334 = vst.msk [vmem:[#allocation2 + $0x30] sm:$0xf] %vm320_vm0, %v316_v9  ;;  %v305_v16 = vld [vmem:[%s1712_s6 + $0x4] sm:$0x1]  ;;  %v318_v18 = vld [vmem:[%s1712_s6 + $0x38] sm:$0xf] }
  0x16   : > { %335 = vst.msk [vmem:[#allocation2 + $0x34] sm:$0x1] %vm322_vm1, %v317_v10  ;;  %v319_v21 = vld [vmem:[%s1712_s6 + $0x3c] sm:$0x1]  ;;  %v306_v24 = vld [vmem:[%s1712_s6 + $0x8] sm:$0xf] }
  0x17   : > { %328 = vst.msk [vmem:[#allocation2 + $0x18] sm:$0xf] %vm320_vm0, %v310_v11  ;;  %v307_v28 = vld [vmem:[%s1712_s6 + $0xc] sm:$0x1]  ;;  %v1582_v11 = vld [vmem:[%s2147_s2 + $0x40] sm:$0xff] }
  0x18   : > { %v1733_v17 = vld [vmem:[#allocation2 + $0x10] sm:$0xf]  ;;  %329 = vst.msk [vmem:[#allocation2 + $0x1c] sm:$0x1] %vm322_vm1, %v311_v12 }
  0x19   : > { %v357_v19 = vunpack.c.l.bf16 %v1733_v17  ;;  %v1738_v20 = vld [vmem:[#allocation2 + $0x14] sm:$0x1]  ;;  %332 = vst.msk [vmem:[#allocation2 + $0x28] sm:$0xf] %vm320_vm0, %v314_v13 }
  0x1a   : > { %v374_v22 = vunpack.c.l.bf16 %v1738_v20  ;;  %v1743_v23 = vld [vmem:[#allocation2 + $0x20] sm:$0xf]  ;;  %333 = vst.msk [vmem:[#allocation2 + $0x2c] sm:$0x1] %vm322_vm1, %v315_v14 }
  0x1b   : > { %v403_v25 = vrot.slane %v357_v19, 1  ;;  %v359_v26 = vunpack.c.l.bf16 %v1743_v23  ;;  %v1750_v27 = vld [vmem:[#allocation2 + $0x24] sm:$0x1]  ;;  %321 = vst.msk [vmem:[#allocation2] sm:$0xf] %vm320_vm0, %v304_v15 }
  0x1c   : > { %v404_v29 = vrot.slane %v374_v22, 1  ;;  %v376_v30 = vunpack.c.l.bf16 %v1750_v27  ;;  %v1757_v31 = vld [vmem:[#allocation2 + $0x30] sm:$0xf]  ;;  %323 = vst.msk [vmem:[#allocation2 + $0x4] sm:$0x1] %vm322_vm1, %v305_v16 }
  0x1d   : > { %v409_v32 = vrot.slane %v359_v26, 1  ;;  %v361_v33 = vunpack.c.l.bf16 %v1757_v31  ;;  %v1763_v34 = vld [vmem:[#allocation2 + $0x34] sm:$0x1]  ;;  %336 = vst.msk [vmem:[#allocation2 + $0x38] sm:$0xf] %vm320_vm0, %v318_v18 }
  0x1e   : > { %v405_v36 = vsel %vm396_vm2, %v403_v25, %v404_v29  ;;  %v410_v37 = vrot.slane %v376_v30, 1  ;;  %v378_v38 = vunpack.c.l.bf16 %v1763_v34  ;;  %v1773_v39 = vld [vmem:[#allocation2 + $0x18] sm:$0xf]  ;;  %337 = vst.msk [vmem:[#allocation2 + $0x3c] sm:$0x1] %vm322_vm1, %v319_v21 }
  0x1f   : > { %1514 = vmatmul.msk.f32.vlgmr.msra.gmra.mxu1 %vm423_vm3, %v405_v36  ;;  %v415_v40 = vrot.slane %v361_v33, 1  ;;  %v358_v41 = vunpack.c.l.bf16 %v1773_v39  ;;  %v1780_v42 = vld [vmem:[#allocation2 + $0x1c] sm:$0x1]  ;;  %324 = vst.msk [vmem:[#allocation2 + $0x8] sm:$0xf] %vm320_vm0, %v306_v24 }
  0x20   : > { %v411_v44 = vsel %vm396_vm2, %v409_v32, %v410_v37  ;;  %v416_v45 = vrot.slane %v378_v38, 1  ;;  %v375_v46 = vunpack.c.l.bf16 %v1780_v42  ;;  %v1790_v47 = vld [vmem:[#allocation2 + $0x28] sm:$0xf]  ;;  %325 = vst.msk [vmem:[#allocation2 + $0xc] sm:$0x1] %vm322_vm1, %v307_v28  ;;  %966 = vmatpush.msra.mxu1 %v1555_v35 }
  0x21   : > { %1516 = vmatmul.msk.f32.vlgmr.msra.gmra.mxu2 %vm423_vm3, %v411_v44  ;;  %v406_v48 = vrot.slane %v358_v41, 1  ;;  %v360_v49 = vunpack.c.l.bf16 %v1790_v47  ;;  %v1797_v50 = vld [vmem:[#allocation2 + $0x2c] sm:$0x1]  ;;  %v542_v17 = vld [vmem:[#allocation2 + $0x20] sm:$0xe] }
  0x22   : > { %v417_v52 = vsel %vm396_vm2, %v415_v40, %v416_v45  ;;  %v407_v53 = vrot.slane %v375_v46, 1  ;;  %v377_v54 = vunpack.c.l.bf16 %v1797_v50  ;;  %v347_v55 = vld [vmem:[#allocation2] sm:$0xf]  ;;  %1058 = vmatpush.msra.mxu2 %v1564_v43  ;;  %v1896_v39 = vld [vmem:[#allocation2 + $0x2c] sm:$0x1] }
  0x23   : > { %v538_v56 = vld [vmem:[#allocation2] sm:$0xe]  ;;  %1518 = vmatmul.msk.f32.vlgmr.msra.gmra.mxu3 %vm423_vm3, %v417_v52  ;;  %v412_v57 = vrot.slane %v360_v49, 1  ;;  %v355_v58 = vunpack.c.l.bf16 %v347_v55  ;;  %v364_v59 = vld [vmem:[#allocation2 + $0x4] sm:$0x1]  ;;  %v771_v27 = vunpack.c.l.bf16 %v1896_v39 }
  0x24   : > { %v408_v60 = vsel %vm396_vm2, %v406_v48, %v407_v53  ;;  %v413_v61 = vrot.slane %v377_v54, 1  ;;  %v372_v62 = vunpack.c.l.bf16 %v364_v59  ;;  %v1812_v63 = vld [vmem:[#allocation2 + $0x38] sm:$0xf]  ;;  %1197 = vmatpush.msra.mxu3 %v1573_v51  ;;  %v546_v3 = vunpack.c.l.bf16 %v538_v56  ;;  %v540_v53 = vld [vmem:[#allocation2 + $0x10] sm:$0xe] }
  0x25   : > { %v397_v0 = vrot.slane %v355_v58, 1  ;;  %v362_v1 = vunpack.c.l.bf16 %v1812_v63  ;;  %v1815_v2 = vld [vmem:[#allocation2 + $0x3c] sm:$0x1]  ;;  %v748_v55 = vld [vmem:[#allocation2 + $0x10] sm:$0xf] }
  0x26   : > { %v414_v4 = vsel %vm396_vm2, %v412_v57, %v413_v61  ;;  %v398_v5 = vrot.slane %v372_v62, 1  ;;  %v379_v6 = vunpack.c.l.bf16 %v1815_v2  ;;  %v348_v7 = vld [vmem:[#allocation2 + $0x8] sm:$0xf]  ;;  %v563_v15 = vrot.slane %v546_v3, 2  ;;  %v1843_v56 = vld [vmem:[#allocation2 + $0x14] sm:$0x1] }
  0x27   : > { %1515 = vmatmul.msk.f32.gmra.mxu1 %vm423_vm3, %v408_v60  ;;  %v418_v8 = vrot.slane %v362_v1, 1  ;;  %v356_v9 = vunpack.c.l.bf16 %v348_v7  ;;  %v365_v10 = vld [vmem:[#allocation2 + $0xc] sm:$0x1]  ;;  %v564_v16 = vrot.slane %v372_v62, 2  ;;  %v539_v25 = vld [vmem:[#allocation2 + $0x8] sm:$0xe]  ;;  %v764_v61 = vunpack.c.l.bf16 %v748_v55 }
  0x28   : > { %v399_v12 = vsel %vm396_vm2, %v397_v0, %v398_v5  ;;  %v419_v13 = vrot.slane %v379_v6, 1  ;;  %v373_v14 = vunpack.c.l.bf16 %v365_v10  ;;  %v746_v28 = vld [vmem:[#allocation2 + $0x8] sm:$0xf]  ;;  %v1832_v29 = vld [vmem:[#allocation2 + $0xc] sm:$0x1]  ;;  %v547_v37 = vunpack.c.l.bf16 %v539_v25 }
  0x29   : > { %1517 = vmatmul.msk.f32.gmra.mxu2 %vm423_vm3, %v414_v4  ;;  %1512 = vmatmul.msk.f32.vlgmr.msra.gmra.mxu0 %vm423_vm3, %v399_v12  ;;  %v400_v21 = vrot.slane %v356_v9, 1  ;;  %v655_v32 = vld [vmem:[#allocation2 + $0x8] sm:$0xf]  ;;  %v565_v35 = vsel %vm562_vm4, %v563_v15, %v564_v16  ;;  %v762_v40 = vunpack.c.l.bf16 %v746_v28  ;;  %v763_v43 = vunpack.c.l.bf16 %v1832_v29  ;;  %v656_v57 = vld [vmem:[#allocation2 + $0x10] sm:$0xf] }
  0x2a   : > { %v420_v18 = vsel %vm396_vm2, %v418_v8, %v419_v13  ;;  %v401_v24 = vrot.slane %v373_v14, 1  ;;  %1312 = vmatpush.msra.mxu0 %v1582_v11  ;;  %v663_v44 = vunpack.c.l.bf16 %v655_v32  ;;  %v566_v45 = vrot.slane %v547_v37, 2  ;;  %v541_v8 = vld [vmem:[#allocation2 + $0x18] sm:$0xe]  ;;  %v1857_v11 = vld [vmem:[#allocation2 + $0x1c] sm:$0x1] }
  0x2b   : > { %1519 = vmatmul.msk.f32.gmra.mxu3 %vm423_vm3, %v420_v18  ;;  %v567_v48 = vrot.slane %v373_v14, 2  ;;  %v794_v51 = vrot.slane %v762_v40, 1  ;;  %v795_v52 = vrot.slane %v763_v43, 1  ;;  %v765_v62 = vunpack.c.l.bf16 %v1843_v56  ;;  %v750_v10 = vld [vmem:[#allocation2 + $0x18] sm:$0xf] }
  0x2c   : > { %v402_v36 = vsel %vm396_vm2, %v400_v21, %v401_v24  ;;  %v664_v0 = vunpack.c.l.bf16 %v656_v57  ;;  %v570_v4 = vrot.slane %v374_v22, 2  ;;  %v797_v5 = vrot.slane %v764_v61, 1  ;;  %v338_v16 = vld [vmem:[%s1863_s22] sm:$0xf]  ;;  %v1879_v28 = vld [vmem:[#allocation2 + $0x24] sm:$0x1] }
  0x2d   : > { %v568_v59 = vsel %vm562_vm4, %v566_v45, %v567_v48  ;;  %v796_v60 = vsel %vm396_vm2, %v794_v51, %v795_v52  ;;  %v798_v7 = vrot.slane %v765_v62, 1  ;;  %v549_v22 = vunpack.c.l.bf16 %v541_v8  ;;  %343 = vst.msk [vmem:[#allocation2 + $0x40] sm:$0xf] %vm320_vm0, %v338_v16  ;;  %v658_v32 = vld [vmem:[#allocation2 + $0x20] sm:$0xf] }
  0x2e   : > { %v766_v13 = vunpack.c.l.bf16 %v750_v10  ;;  %v767_v14 = vunpack.c.l.bf16 %v1857_v11  ;;  %v573_v21 = vrot.slane %v375_v46, 2  ;;  %v769_v42 = vunpack.c.l.bf16 %v1879_v28  ;;  %v754_v55 = vld [vmem:[#allocation2 + $0x28] sm:$0xf]  ;;  %v1911_v23 = vld [vmem:[#allocation2 + $0x34] sm:$0x1] }
  0x2f   : > { %1520 = vmatmul.msk.f32.vlgmr.msrb.gmra.mxu1 %vm423_vm3, %v355_v58  ;;  %v548_v58 = vunpack.c.l.bf16 %v540_v53  ;;  %v799_v20 = vsel %vm396_vm2, %v797_v5, %v798_v7  ;;  %v572_v18 = vrot.slane %v549_v22, 2  ;;  %v666_v46 = vunpack.c.l.bf16 %v658_v32  ;;  %v543_v53 = vld [vmem:[#allocation2 + $0x28] sm:$0xe]  ;;  %v544_v5 = vld [vmem:[#allocation2 + $0x30] sm:$0xe] }
  0x30   : > { %v800_v24 = vrot.slane %v766_v13, 1  ;;  %v801_v25 = vrot.slane %v767_v14, 1  ;;  %v576_v48 = vrot.slane %v376_v30, 2  ;;  %v804_v52 = vrot.slane %v769_v42, 1  ;;  %v756_v7 = vld [vmem:[#allocation2 + $0x30] sm:$0xf] }
  0x31   : > { %1529 = vmatmul.msk.f32.vlgmr.msrb.gmra.mxu2 %vm423_vm3, %v565_v35  ;;  %1513 = vmatmul.msk.f32.gmra.mxu0 %vm423_vm3, %v402_v36  ;;  %v569_v3 = vrot.slane %v548_v58, 2  ;;  %v550_v35 = vunpack.c.l.bf16 %v542_v17  ;;  %v339_v36 = vld [vmem:[%s1863_s22 + $0x4] sm:$0x1]  ;;  %v574_v37 = vsel %vm562_vm4, %v572_v18, %v573_v21  ;;  %v552_v8 = vunpack.c.l.bf16 %v544_v5  ;;  %v545_v16 = vld [vmem:[#allocation2 + $0x38] sm:$0xe] }
  0x32   : > { %v802_v40 = vsel %vm396_vm2, %v800_v24, %v801_v25  ;;  %344 = vst.msk [vmem:[#allocation2 + $0x44] sm:$0x1] %vm322_vm1, %v339_v36  ;;  %v773_v50 = vunpack.c.l.bf16 %v1911_v23  ;;  %v582_v22 = vrot.slane %v378_v38, 2  ;;  %v758_v18 = vld [vmem:[#allocation2 + $0x38] sm:$0xf]  ;;  %v553_v25 = vunpack.c.l.bf16 %v545_v16 }
  0x33   : > { %1538 = vmatmul.msk.f32.vlgmr.msrb.gmra.mxu3 %vm423_vm3, %v663_v44  ;;  %v571_v12 = vsel %vm562_vm4, %v569_v3, %v570_v4  ;;  %v575_v45 = vrot.slane %v550_v35, 2  ;;  %v807_v4 = vrot.slane %v771_v27, 1  ;;  %v1926_v47 = vld [vmem:[#allocation2 + $0x3c] sm:$0x1]  ;;  %v774_v17 = vunpack.c.l.bf16 %v758_v18  ;;  %v1096_v56 = vld [vmem:[#allocation2 + $0x20] sm:$0xf] }
  0x34   : > { %v775_v34 = vunpack.c.l.bf16 %v1926_v47  ;;  %v584_v32 = vrot.slane %v553_v25, 2  ;;  %v585_v35 = vrot.slane %v379_v6, 2  ;;  %v1103_v39 = vld [vmem:[#allocation2 + $0x3c] sm:$0x1]  ;;  %v1104_v23 = vld [vmem:[#allocation2 + $0x40] sm:$0xf] }
  0x35   : > { %v577_v57 = vsel %vm562_vm4, %v575_v45, %v576_v48  ;;  %v812_v36 = vrot.slane %v774_v17, 1  ;;  %v1093_v45 = vld [vmem:[#allocation2 + $0x14] sm:$0x1] }
  0x36   : > { %v586_v48 = vsel %vm562_vm4, %v584_v32, %v585_v35 }
  0x37   : > { %1521 = vmatmul.msk.f32.gmra.mxu1 %vm423_vm3, %v356_v9  ;;  %v657_v9 = vld [vmem:[#allocation2 + $0x18] sm:$0xf] }
  0x38   : > { %v665_v15 = vunpack.c.l.bf16 %v657_v9 }
  0x39   : > { %1530 = vmatmul.msk.f32.gmra.mxu2 %vm423_vm3, %v568_v59  ;;  %1547 = vmatmul.msk.f32.vlgmr.msrb.gmra.mxu0 %vm423_vm3, %v796_v60  ;;  %v551_v59 = vunpack.c.l.bf16 %v543_v53  ;;  %v770_v60 = vunpack.c.l.bf16 %v754_v55  ;;  %v1941_v31 = vld [vmem:[#allocation2 + $0x44] sm:$0x1]  ;;  %v1109_v55 = vunpack.c.l.bf16 %v1093_v45 }
  0x3a   : > { %v777_v2 = vunpack.c.l.bf16 %v1941_v31 }
  0x3b   : > { %1539 = vmatmul.msk.f32.gmra.mxu3 %vm423_vm3, %v664_v0  ;;  %v578_v61 = vrot.slane %v551_v59, 2  ;;  %v579_v0 = vrot.slane %v377_v54, 2  ;;  %v806_v3 = vrot.slane %v770_v60, 1  ;;  %v1001_v59 = vld [vmem:[#allocation2 + $0x10] sm:$0xf] }
  0x3c   : > { %v1009_v29 = vunpack.c.l.bf16 %v1001_v59 }
  0x3d   : > { %v580_v10 = vsel %vm562_vm4, %v578_v61, %v579_v0  ;;  %v808_v9 = vsel %vm396_vm2, %v806_v3, %v807_v4  ;;  %v1231_v61 = vld [vmem:[#allocation2 + $0x10] sm:$0xe]  ;;  %v1095_v4 = vld [vmem:[#allocation2 + $0x1c] sm:$0x1] }
  0x3f   : > { %1522 = vmatmul.msk.f32.gmra.mxu1 %vm423_vm3, %v357_v19  ;;  %v752_v19 = vld [vmem:[#allocation2 + $0x20] sm:$0xf] }
  0x40   : > { %v768_v44 = vunpack.c.l.bf16 %v752_v19  ;;  %v885_v19 = vld [vmem:[#allocation2 + $0x8] sm:$0xe] }
  0x41   : > { %1531 = vmatmul.msk.f32.gmra.mxu2 %vm423_vm3, %v571_v12  ;;  %1548 = vmatmul.msk.f32.gmra.mxu0 %vm423_vm3, %v799_v20  ;;  %v772_v12 = vunpack.c.l.bf16 %v756_v7  ;;  %v581_v20 = vrot.slane %v552_v8, 2  ;;  %v1239_v7 = vunpack.c.l.bf16 %v1231_v61  ;;  %v1004_v61 = vld [vmem:[#allocation2 + $0x28] sm:$0xf] }
  0x42   : > { %v803_v51 = vrot.slane %v768_v44, 1  ;;  %v893_v44 = vunpack.c.l.bf16 %v885_v19 }
  0x43   : > { %1540 = vmatmul.msk.f32.gmra.mxu3 %vm423_vm3, %v665_v15  ;;  %v809_v13 = vrot.slane %v772_v12, 1  ;;  %v810_v15 = vrot.slane %v773_v50, 1  ;;  %v583_v21 = vsel %vm562_vm4, %v581_v20, %v582_v22  ;;  %v1111_v12 = vunpack.c.l.bf16 %v1095_v4  ;;  %v1002_v20 = vld [vmem:[#allocation2 + $0x18] sm:$0xf] }
  0x44   : > { %v805_v58 = vsel %vm396_vm2, %v803_v51, %v804_v52  ;;  %v1255_v22 = vrot.slane %v1239_v7, 2  ;;  %v1101_v7 = vld [vmem:[#allocation2 + $0x34] sm:$0x1] }
  0x45   : > { %v811_v24 = vsel %vm396_vm2, %v809_v13, %v810_v15  ;;  %v1256_v13 = vrot.slane %v1109_v55, 2  ;;  %v1232_v15 = vld [vmem:[#allocation2 + $0x18] sm:$0xe] }
  0x46   : > { %v1240_v17 = vunpack.c.l.bf16 %v1232_v15  ;;  %v1005_v15 = vld [vmem:[#allocation2 + $0x30] sm:$0xf] }
  0x47   : > { %1523 = vmatmul.msk.f32.gmra.mxu1 %vm423_vm3, %v358_v41  ;;  %v659_v41 = vld [vmem:[#allocation2 + $0x28] sm:$0xf]  ;;  %v1257_v25 = vsel %vm562_vm4, %v1255_v22, %v1256_v13  ;;  %v922_v22 = vrot.slane %v771_v27, 2  ;;  %v890_v13 = vld [vmem:[#allocation2 + $0x30] sm:$0xe] }
  0x48   : > { %v667_v30 = vunpack.c.l.bf16 %v659_v41  ;;  %v909_v41 = vrot.slane %v893_v44, 2  ;;  %v1259_v44 = vrot.slane %v1111_v12, 2 }
  0x49   : > { %1532 = vmatmul.msk.f32.gmra.mxu2 %vm423_vm3, %v574_v37  ;;  %1549 = vmatmul.msk.f32.gmra.mxu0 %vm423_vm3, %v802_v40  ;;  %v813_v37 = vrot.slane %v775_v34, 1  ;;  %v760_v40 = vld [vmem:[#allocation2 + $0x40] sm:$0xf] }
  0x4a   : > { %v776_v52 = vunpack.c.l.bf16 %v760_v40  ;;  %v1003_v40 = vld [vmem:[#allocation2 + $0x20] sm:$0xf] }
  0x4b   : > { %1541 = vmatmul.msk.f32.gmra.mxu3 %vm423_vm3, %v666_v46  ;;  %v1092_v46 = vld [vmem:[#allocation2 + $0x10] sm:$0xf]  ;;  %v814_v51 = vsel %vm396_vm2, %v812_v36, %v813_v37  ;;  %v916_v36 = vrot.slane %v767_v14, 2  ;;  %v888_v37 = vld [vmem:[#allocation2 + $0x20] sm:$0xe]  ;;  %v1011_v11 = vunpack.c.l.bf16 %v1003_v40 }
  0x4c   : > { %v1108_v53 = vunpack.c.l.bf16 %v1092_v46  ;;  %v815_v60 = vrot.slane %v776_v52, 1  ;;  %v896_v52 = vunpack.c.l.bf16 %v888_v37  ;;  %v1098_v14 = vld [vmem:[#allocation2 + $0x28] sm:$0xf]  ;;  %v1119_v37 = vunpack.c.l.bf16 %v1103_v39  ;;  %v891_v40 = vld [vmem:[#allocation2 + $0x38] sm:$0xe] }
  0x4e   : > { %v1140_v63 = vrot.slane %v1108_v53, 1  ;;  %v918_v59 = vrot.slane %v896_v52, 2  ;;  %v1156_v52 = vrot.slane %v1119_v37, 1 }
  0x4f   : > { %1524 = vmatmul.msk.f32.gmra.mxu1 %vm423_vm3, %v359_v26  ;;  %v660_v26 = vld [vmem:[#allocation2 + $0x30] sm:$0xf] }
  0x50   : > { %v668_v54 = vunpack.c.l.bf16 %v660_v26 }
  0x51   : > { %1533 = vmatmul.msk.f32.gmra.mxu2 %vm423_vm3, %v577_v57  ;;  %1550 = vmatmul.msk.f32.gmra.mxu0 %vm423_vm3, %v805_v58  ;;  %v910_v57 = vrot.slane %v763_v43, 2  ;;  %v886_v58 = vld [vmem:[#allocation2 + $0x10] sm:$0xe]  ;;  %v1094_v43 = vld [vmem:[#allocation2 + $0x18] sm:$0xf] }
  0x52   : > { %v894_v3 = vunpack.c.l.bf16 %v886_v58  ;;  %v341_v58 = vld [vmem:[%s1863_s22 + $0xc] sm:$0x1] }
  0x53   : > { %1542 = vmatmul.msk.f32.gmra.mxu3 %vm423_vm3, %v667_v30  ;;  %v816_v30 = vrot.slane %v777_v2, 1  ;;  %v911_v0 = vsel %vm562_vm4, %v909_v41, %v910_v57  ;;  %v340_v41 = vld [vmem:[%s1863_s22 + $0x8] sm:$0xf]  ;;  %346 = vst.msk [vmem:[#allocation2 + $0x4c] sm:$0x1] %vm322_vm1, %v341_v58 }
  0x54   : > { %v912_v8 = vrot.slane %v894_v3, 2  ;;  %345 = vst.msk [vmem:[#allocation2 + $0x48] sm:$0xf] %vm320_vm0, %v340_v41 }
  0x55   : > { %v817_v5 = vsel %vm396_vm2, %v815_v60, %v816_v30  ;;  %v919_v60 = vrot.slane %v769_v42, 2  ;;  %v1114_v30 = vunpack.c.l.bf16 %v1098_v14 }
  0x57   : > { %1525 = vmatmul.msk.f32.gmra.mxu1 %vm423_vm3, %v360_v49  ;;  %v661_v49 = vld [vmem:[#allocation2 + $0x38] sm:$0xf]  ;;  %v1149_v4 = vrot.slane %v1114_v30, 1  ;;  %v1007_v30 = vld [vmem:[#allocation2 + $0x40] sm:$0xf] }
  0x58   : > { %v669_v38 = vunpack.c.l.bf16 %v661_v49  ;;  %v1144_v49 = vrot.slane %v1111_v12, 1  ;;  %v1117_v12 = vunpack.c.l.bf16 %v1101_v7  ;;  %v1015_v47 = vunpack.c.l.bf16 %v1007_v30 }
  0x59   : > { %1534 = vmatmul.msk.f32.gmra.mxu2 %vm423_vm3, %v580_v10  ;;  %1551 = vmatmul.msk.f32.gmra.mxu0 %vm423_vm3, %v808_v9  ;;  %v913_v10 = vrot.slane %v765_v62, 2  ;;  %v1110_v9 = vunpack.c.l.bf16 %v1094_v43  ;;  %v1097_v62 = vld [vmem:[#allocation2 + $0x24] sm:$0x1]  ;;  %v920_v43 = vsel %vm562_vm4, %v918_v59, %v919_v60  ;;  %v928_v59 = vrot.slane %v775_v34, 2  ;;  %v892_v60 = vld [vmem:[#allocation2 + $0x40] sm:$0xe] }
  0x5a   : > { %v1113_v19 = vunpack.c.l.bf16 %v1097_v62 }
  0x5b   : > { %1543 = vmatmul.msk.f32.gmra.mxu3 %vm423_vm3, %v668_v54  ;;  %v887_v54 = vld [vmem:[#allocation2 + $0x18] sm:$0xe]  ;;  %v914_v16 = vsel %vm562_vm4, %v912_v8, %v913_v10  ;;  %v1143_v18 = vrot.slane %v1110_v9, 1  ;;  %v1106_v34 = vld [vmem:[#allocation2 + $0x48] sm:$0xf] }
  0x5c   : > { %v1147_v45 = vrot.slane %v1113_v19, 1  ;;  %v1262_v3 = vrot.slane %v1113_v19, 2 }
  0x5d   : > { %v1145_v32 = vsel %vm396_vm2, %v1143_v18, %v1144_v49 }
  0x5f   : > { %1526 = vmatmul.msk.f32.gmra.mxu1 %vm423_vm3, %v361_v33  ;;  %v662_v33 = vld [vmem:[#allocation2 + $0x40] sm:$0xf] }
  0x60   : > { %v670_v6 = vunpack.c.l.bf16 %v662_v33  ;;  %v1258_v33 = vrot.slane %v1240_v17, 2  ;;  %v1102_v17 = vld [vmem:[#allocation2 + $0x38] sm:$0xf] }
  0x61   : > { %1535 = vmatmul.msk.f32.gmra.mxu2 %vm423_vm3, %v583_v21  ;;  %1552 = vmatmul.msk.f32.gmra.mxu0 %vm423_vm3, %v811_v24  ;;  %v895_v21 = vunpack.c.l.bf16 %v887_v54  ;;  %v1010_v24 = vunpack.c.l.bf16 %v1002_v20 }
  0x62   : > { %v1260_v53 = vsel %vm562_vm4, %v1258_v33, %v1259_v44  ;;  %v1006_v33 = vld [vmem:[#allocation2 + $0x38] sm:$0xf] }
  0x63   : > { %1544 = vmatmul.msk.f32.gmra.mxu3 %vm423_vm3, %v669_v38  ;;  %v1112_v38 = vunpack.c.l.bf16 %v1096_v56  ;;  %v915_v35 = vrot.slane %v895_v21, 2  ;;  %v1153_v21 = vrot.slane %v1117_v12, 1  ;;  %v1235_v56 = vld [vmem:[#allocation2 + $0x30] sm:$0xe]  ;;  %v1014_v14 = vunpack.c.l.bf16 %v1006_v33 }
  0x65   : > { %v1146_v46 = vrot.slane %v1112_v38, 1  ;;  %v1243_v38 = vunpack.c.l.bf16 %v1235_v56 }
  0x67   : > { %1527 = vmatmul.msk.f32.gmra.mxu1 %vm423_vm3, %v362_v1  ;;  %v1141_v1 = vrot.slane %v1109_v55, 1  ;;  %v1148_v57 = vsel %vm396_vm2, %v1146_v46, %v1147_v45  ;;  %v1267_v44 = vrot.slane %v1243_v38, 2  ;;  %v1268_v46 = vrot.slane %v1117_v12, 2  ;;  %v1236_v45 = vld [vmem:[#allocation2 + $0x38] sm:$0xe] }
  0x68   : > { %v1008_v12 = vld [vmem:[#allocation2 + $0x48] sm:$0xf] }
  0x69   : > { %1536 = vmatmul.msk.f32.gmra.mxu2 %vm423_vm3, %v586_v48  ;;  %1553 = vmatmul.msk.f32.gmra.mxu0 %vm423_vm3, %v814_v51  ;;  %v1142_v26 = vsel %vm396_vm2, %v1140_v63, %v1141_v1  ;;  %v1233_v48 = vld [vmem:[#allocation2 + $0x20] sm:$0xe]  ;;  %v917_v51 = vsel %vm562_vm4, %v915_v35, %v916_v36  ;;  %v889_v1 = vld [vmem:[#allocation2 + $0x28] sm:$0xe]  ;;  %v925_v35 = vrot.slane %v773_v50, 2  ;;  %v1118_v36 = vunpack.c.l.bf16 %v1102_v17 }
  0x6a   : > { %v1241_v55 = vunpack.c.l.bf16 %v1233_v48  ;;  %v897_v42 = vunpack.c.l.bf16 %v889_v1  ;;  %v1105_v50 = vld [vmem:[#allocation2 + $0x44] sm:$0x1]  ;;  %v1271_v1 = vrot.slane %v1119_v37, 2 }
  0x6b   : > { %1545 = vmatmul.msk.f32.gmra.mxu3 %vm423_vm3, %v670_v6  ;;  %v1099_v6 = vld [vmem:[#allocation2 + $0x2c] sm:$0x1]  ;;  %v1121_v41 = vunpack.c.l.bf16 %v1105_v50 }
  0x6c   : > { %v1115_v63 = vunpack.c.l.bf16 %v1099_v6  ;;  %v921_v20 = vrot.slane %v897_v42, 2  ;;  %v1269_v6 = vsel %vm562_vm4, %v1267_v44, %v1268_v46 }
  0x6e   : > { %v1150_v28 = vrot.slane %v1115_v63, 1  ;;  %v1265_v18 = vrot.slane %v1115_v63, 2  ;;  %v923_v62 = vsel %vm562_vm4, %v921_v20, %v922_v22  ;;  %v1274_v20 = vrot.slane %v1121_v41, 2  ;;  %v1238_v22 = vld [vmem:[#allocation2 + $0x48] sm:$0xe] }
  0x6f   : > { %1556 = vmatmul.msk.f32.vlgmr.msra.gmra.mxu1 %vm423_vm3, %v911_v0  ;;  %v1261_v0 = vrot.slane %v1241_v55, 2  ;;  %v1120_v55 = vunpack.c.l.bf16 %v1104_v23 }
  0x70   : > { %v1151_v54 = vsel %vm396_vm2, %v1149_v4, %v1150_v28  ;;  %v900_v4 = vunpack.c.l.bf16 %v892_v60  ;;  %v1107_v28 = vld [vmem:[#allocation2 + $0x4c] sm:$0x1] }
  0x71   : > { %1565 = vmatmul.msk.f32.vlgmr.msra.gmra.mxu2 %vm423_vm3, %v1009_v29  ;;  %1554 = vmatmul.msk.f32.gmra.mxu0 %vm423_vm3, %v817_v5  ;;  %v1234_v29 = vld [vmem:[#allocation2 + $0x28] sm:$0xe]  ;;  %v1100_v5 = vld [vmem:[#allocation2 + $0x30] sm:$0xf]  ;;  %v1263_v8 = vsel %vm562_vm4, %v1261_v0, %v1262_v3  ;;  %v1159_v0 = vrot.slane %v1121_v41, 1 }
  0x72   : > { %v1242_v10 = vunpack.c.l.bf16 %v1234_v29  ;;  %v1116_v9 = vunpack.c.l.bf16 %v1100_v5  ;;  %v1237_v3 = vld [vmem:[#allocation2 + $0x40] sm:$0xe] }
  0x73   : > { %1574 = vmatmul.msk.f32.vlgmr.msra.gmra.mxu3 %vm423_vm3, %v1142_v26  ;;  %v1012_v26 = vunpack.c.l.bf16 %v1004_v61  ;;  %v1158_v61 = vrot.slane %v1120_v55, 1  ;;  %v1245_v5 = vunpack.c.l.bf16 %v1237_v3 }
  0x74   : > { %v1152_v49 = vrot.slane %v1116_v9, 1  ;;  %v1123_v9 = vunpack.c.l.bf16 %v1107_v28 }
  0x75   : > { %v1160_v7 = vsel %vm396_vm2, %v1158_v61, %v1159_v0 }
  0x76   : > { %v1154_v19 = vsel %vm396_vm2, %v1152_v49, %v1153_v21  ;;  %v1277_v17 = vrot.slane %v1123_v9, 2 }
  0x77   : > { %1557 = vmatmul.msk.f32.gmra.mxu1 %vm423_vm3, %v914_v16  ;;  %v1264_v16 = vrot.slane %v1242_v10, 2  ;;  %v1122_v10 = vunpack.c.l.bf16 %v1106_v34 }
  0x79   : > { %1566 = vmatmul.msk.f32.gmra.mxu2 %vm423_vm3, %v1010_v24  ;;  %1583 = vmatmul.msk.f32.vlgmr.msra.gmra.mxu0 %vm423_vm3, %v1257_v25  ;;  %v898_v24 = vunpack.c.l.bf16 %v890_v13  ;;  %v1013_v25 = vunpack.c.l.bf16 %v1005_v15  ;;  %v1266_v27 = vsel %vm562_vm4, %v1264_v16, %v1265_v18  ;;  %v1161_v31 = vrot.slane %v1122_v10, 1 }
  0x7a   : > { %v1016_v18 = vunpack.c.l.bf16 %v1008_v12 }
  0x7b   : > { %1575 = vmatmul.msk.f32.gmra.mxu3 %vm423_vm3, %v1145_v32  ;;  %v924_v32 = vrot.slane %v898_v24, 2 }
  0x7d   : > { %v926_v48 = vsel %vm562_vm4, %v924_v32, %v925_v35 }
  0x7f   : > { %1558 = vmatmul.msk.f32.gmra.mxu1 %vm423_vm3, %v917_v51  ;;  %v1155_v51 = vrot.slane %v1118_v36, 1 }
  0x81   : > { %1567 = vmatmul.msk.f32.gmra.mxu2 %vm423_vm3, %v1011_v11  ;;  %1584 = vmatmul.msk.f32.gmra.mxu0 %vm423_vm3, %v1260_v53  ;;  %v899_v11 = vunpack.c.l.bf16 %v891_v40  ;;  %v1244_v53 = vunpack.c.l.bf16 %v1236_v45 }
  0x83   : > { %1576 = vmatmul.msk.f32.gmra.mxu3 %vm423_vm3, %v1148_v57  ;;  %v1157_v57 = vsel %vm396_vm2, %v1155_v51, %v1156_v52  ;;  %v927_v58 = vrot.slane %v899_v11, 2  ;;  %v1270_v63 = vrot.slane %v1244_v53, 2 }
  0x85   : > { %v1272_v42 = vsel %vm562_vm4, %v1270_v63, %v1271_v1 }
  0x87   : > { %1559 = vmatmul.msk.f32.gmra.mxu1 %vm423_vm3, %v920_v43  ;;  %v929_v43 = vsel %vm562_vm4, %v927_v58, %v928_v59 }
  0x89   : > { %1568 = vmatmul.msk.f32.gmra.mxu2 %vm423_vm3, %v1012_v26  ;;  %1585 = vmatmul.msk.f32.gmra.mxu0 %vm423_vm3, %v1263_v8  ;;  %v930_v26 = vrot.slane %v900_v4, 2  ;;  %v931_v8 = vrot.slane %v777_v2, 2  ;;  %v1162_v2 = vrot.slane %v1123_v9, 1 }
  0x8b   : > { %1577 = vmatmul.msk.f32.gmra.mxu3 %vm423_vm3, %v1151_v54  ;;  %v1273_v54 = vrot.slane %v1245_v5, 2  ;;  %v932_v16 = vsel %vm562_vm4, %v930_v26, %v931_v8  ;;  %v1163_v24 = vsel %vm396_vm2, %v1161_v31, %v1162_v2  ;;  %v2082_v2 = vld [vmem:[%s2148_s3] ss:$0 sm:$0xff] }
  0x8d   : > { %v1275_v56 = vsel %vm562_vm4, %v1273_v54, %v1274_v20 }
  0x8f   : > { %1560 = vmatmul.msk.f32.gmra.mxu1 %vm423_vm3, %v923_v62  ;;  %v1246_v62 = vunpack.c.l.bf16 %v1238_v22 }
  0x91   : > { %1569 = vmatmul.msk.f32.gmra.mxu2 %vm423_vm3, %v1013_v25  ;;  %1586 = vmatmul.msk.f32.gmra.mxu0 %vm423_vm3, %v1266_v27  ;;  %v1276_v25 = vrot.slane %v1246_v62, 2 }
  0x93   : > { %1578 = vmatmul.msk.f32.gmra.mxu3 %vm423_vm3, %v1154_v19  ;;  %v1278_v32 = vsel %vm562_vm4, %v1276_v25, %v1277_v17 }
  0x97   : > { %1561 = vmatmul.msk.f32.gmra.mxu1 %vm423_vm3, %v926_v48 }
  0x99   : > { %1570 = vmatmul.msk.f32.gmra.mxu2 %vm423_vm3, %v1014_v14  ;;  %1587 = vmatmul.msk.f32.gmra.mxu0 %vm423_vm3, %v1269_v6 }
  0x9b   : > { %1579 = vmatmul.msk.f32.gmra.mxu3 %vm423_vm3, %v1157_v57 }
  0x9c   : > { %v2014_v29 = vpop.f32.mrf.mxu1 }
  0x9f   : > { %1562 = vmatmul.msk.f32.gmra.mxu1 %vm423_vm3, %v929_v43 }
  0xa1   : > { %1571 = vmatmul.msk.f32.gmra.mxu2 %vm423_vm3, %v1015_v47  ;;  %1588 = vmatmul.msk.f32.gmra.mxu0 %vm423_vm3, %v1272_v42 }
  0xa3   : > { %1580 = vmatmul.msk.f32.gmra.mxu3 %vm423_vm3, %v1160_v7 }
  0xa4   : > { %v2025_v13 = vpop.f32.mrf.mxu2  ;;  %v2027_v15 = vpop.f32.mrf.mxu1 }
  0xa6   : > { %v2030_v49 = vpop.f32.mrf.mxu3  ;;  %v457_v21 = vpop.f32.mrf.mxu0 }
  0xa7   : > { %1563 = vmatmul.msk.f32.gmra.mxu1 %vm423_vm3, %v932_v16 }
  0xa9   : > { %1572 = vmatmul.msk.f32.gmra.mxu2 %vm423_vm3, %v1016_v18  ;;  %1589 = vmatmul.msk.f32.gmra.mxu0 %vm423_vm3, %v1275_v56 }
  0xab   : > { %1581 = vmatmul.msk.f32.gmra.mxu3 %vm423_vm3, %v1163_v24 }
  0xac   : > { %v2038_v39 = vpop.f32.mrf.mxu2  ;;  %v514_v27 = vpop.f32.mrf.mxu1 }
  0xad   : > { %v515_v3 = vadd.f32 %v514_v27, %v457_v21 }
  0xae   : > { %v2040_v38 = vpop.f32.mrf.mxu3  ;;  %v460_v19 = vpop.f32.mrf.mxu0 }
  0xb1   : > { %1590 = vmatmul.msk.f32.gmra.mxu0 %vm423_vm3, %v1278_v32 }
  0xb4   : > { %v622_v35 = vpop.f32.mrf.mxu2  ;;  %v517_v36 = vpop.f32.mrf.mxu1 }
  0xb5   : > { %v646_v43 = vadd.f32 %v622_v35, %v515_v3  ;;  %v518_v5 = vadd.f32 %v517_v36, %v460_v19 }
  0xb6   : > { %v714_v37 = vpop.f32.mrf.mxu3  ;;  %v853_v40 = vpop.f32.mrf.mxu0 }
  0xb7   : > { %v738_v34 = vadd.f32 %v714_v37, %v646_v43 }
  0xb9   : > { %v877_v7 = vadd.f32 %v853_v40, %v738_v34 }
  0xbc   : > { %v625_v33 = vpop.f32.mrf.mxu2  ;;  %v520_v44 = vpop.f32.mrf.mxu1 }
  0xbd   : > { %v647_v26 = vadd.f32 %v625_v33, %v518_v5  ;;  %v521_v16 = vadd.f32 %v520_v44, %v2014_v29 }
  0xbe   : > { %v717_v46 = vpop.f32.mrf.mxu3  ;;  %v856_v45 = vpop.f32.mrf.mxu0 }
  0xbf   : > { %v739_v12 = vadd.f32 %v717_v46, %v647_v26 }
  0xc1   : > { %v878_v18 = vadd.f32 %v856_v45, %v739_v12 }
  0xc4   : > { %v628_v48 = vpop.f32.mrf.mxu2  ;;  %v523_v51 = vpop.f32.mrf.mxu1 }
  0xc5   : > { %v648_v21 = vadd.f32 %v628_v48, %v521_v16  ;;  %v524_v36 = vadd.f32 %v523_v51, %v2027_v15 }
  0xc6   : > { %v720_v52 = vpop.f32.mrf.mxu3  ;;  %v859_v11 = vpop.f32.mrf.mxu0 }
  0xc7   : > { %v740_v27 = vadd.f32 %v720_v52, %v648_v21 }
  0xc9   : > { %v879_v33 = vadd.f32 %v859_v11, %v740_v27 }
  0xcc   : > { %v631_v23 = vpop.f32.mrf.mxu2  ;;  %v2044_v50 = vpop.f32.mrf.mxu1 }
  0xcd   : > { %v649_v44 = vadd.f32 %v631_v23, %v524_v36  ;;  %v527_v15 = vadd.f32 %v2044_v50, %v2025_v13 }
  0xce   : > { %v723_v14 = vpop.f32.mrf.mxu3  ;;  %v2046_v6 = vpop.f32.mrf.mxu0 }
  0xcf   : > { %v741_v43 = vadd.f32 %v723_v14, %v649_v44 }
  0xd1   : > { %v880_v11 = vadd.f32 %v2046_v6, %v741_v43 }
  0xd4   : > { %v2048_v53 = vpop.f32.mrf.mxu2  ;;  %v2050_v55 = vpop.f32.mrf.mxu1 }
  0xd5   : > { %v650_v23 = vadd.f32 %v2048_v53, %v527_v15  ;;  %v530_v16 = vadd.f32 %v2050_v55, %v2038_v39 }
  0xd6   : > { %v2052_v41 = vpop.f32.mrf.mxu3  ;;  %v2054_v57 = vpop.f32.mrf.mxu0 }
  0xdc   : > { %v2056_v58 = vpop.f32.mrf.mxu2  ;;  %v2058_v59 = vpop.f32.mrf.mxu1 }
  0xde   : > { %v2060_v60 = vpop.f32.mrf.mxu3  ;;  %v2062_v30 = vpop.f32.mrf.mxu0 }
  0xe4   : > { %v2064_v63 = vpop.f32.mrf.mxu2  ;;  %v2066_v1 = vpop.f32.mrf.mxu1 }
  0xe6   : > { %v2068_v61 = vpop.f32.mrf.mxu3  ;;  %v2070_v0 = vpop.f32.mrf.mxu0 }
  0xec   : > { %v2072_v4 = vpop.f32.mrf.mxu2  ;;  %v968_v47 = vpop.f32.mrf.mxu1 }
  0xed   : > { %v992_v8 = vadd.f32 %v968_v47, %v877_v7 }
  0xee   : > { %v2074_v28 = vpop.f32.mrf.mxu3  ;;  %v2076_v42 = vpop.f32.mrf.mxu0 }
  0xf4   : > { %v1060_v10 = vpop.f32.mrf.mxu2  ;;  %v971_v9 = vpop.f32.mrf.mxu1 }
  0xf5   : > { %v1084_v54 = vadd.f32 %v1060_v10, %v992_v8  ;;  %v993_v62 = vadd.f32 %v971_v9, %v878_v18  ;;  %v651_v18 = vadd.f32 %v2056_v58, %v530_v16 }
  0xf6   : > { %v1199_v20 = vpop.f32.mrf.mxu3  ;;  %v1314_v22 = vpop.f32.mrf.mxu0 }
  0xf7   : > { %v1223_v31 = vadd.f32 %v1199_v20, %v1084_v54  ;;  %v742_v54 = vadd.f32 %v2052_v41, %v650_v23 }
  0xf9   : > { %v1338_v56 = vadd.f32 %v1314_v22, %v1223_v31  ;;  %v881_v53 = vadd.f32 %v2054_v57, %v742_v54 }
  0xfb   : > { %v1350_v24 = vadd.f32 %v2082_v2, %v1338_v56 }
  0xfc   : > { %v1063_v25 = vpop.f32.mrf.mxu2  ;;  %v974_v17 = vpop.f32.mrf.mxu1 }
  0xfd   : > { %vm1358_vm5 = vcmp.ge.f32.partialorder %v1350_v24, 0.0  ;;  %v1366_v29 = vmul.f32 0.2, %v1350_v24  ;;  %v1085_v19 = vadd.f32 %v1063_v25, %v993_v62  ;;  %v994_v45 = vadd.f32 %v974_v17, %v879_v33 }
  0xfe   : > { %v1202_v32 = vpop.f32.mrf.mxu3  ;;  %v1317_v35 = vpop.f32.mrf.mxu0  ;;  %v743_v25 = vadd.f32 %v2060_v60, %v651_v18 }
  0xff   : > { %v1374_v37 = vsel %vm1358_vm5, %v1350_v24, %v1366_v29  ;;  %v1224_v40 = vadd.f32 %v1202_v32, %v1085_v19  ;;  %v533_v29 = vadd.f32 %v2058_v59, %v2030_v49 }
 0x100   : > { %1382 = vst.msk [vmem:[%s2089_s28] sm:$0xff] %vm423_vm3, %v1374_v37  ;;  %v882_v58 = vadd.f32 %v2062_v30, %v743_v25 }
 0x101   : > { %v1339_v46 = vadd.f32 %v1317_v35, %v1224_v40  ;;  %v652_v32 = vadd.f32 %v2064_v63, %v533_v29 }
 0x103   : > { %v1351_v48 = vadd.f32 %v2082_v2, %v1339_v46  ;;  %v744_v40 = vadd.f32 %v2068_v61, %v652_v32 }
 0x104   : > { %v1066_v52 = vpop.f32.mrf.mxu2  ;;  %v977_v3 = vpop.f32.mrf.mxu1 }
 0x105   : > { %vm1359_vm6 = vcmp.ge.f32.partialorder %v1351_v48, 0.0  ;;  %v1367_v47 = vmul.f32 0.2, %v1351_v48  ;;  %v1086_v34 = vadd.f32 %v1066_v52, %v994_v45  ;;  %v995_v10 = vadd.f32 %v977_v3, %v880_v11 }
 0x106   : > { %v1205_v5 = vpop.f32.mrf.mxu3  ;;  %v1320_v7 = vpop.f32.mrf.mxu0  ;;  %v536_v45 = vadd.f32 %v2066_v1, %v2040_v38  ;;  %v883_v63 = vadd.f32 %v2070_v0, %v744_v40 }
 0x107   : > { %v1375_v51 = vsel %vm1359_vm6, %v1351_v48, %v1367_v47  ;;  %v1225_v26 = vadd.f32 %v1205_v5, %v1086_v34 }
 0x108   : > { %1383 = vst.msk [vmem:[%s2089_s28 + $0x8] sm:$0xff] %vm423_vm3, %v1375_v51  ;;  %v653_v52 = vadd.f32 %v2072_v4, %v536_v45 }
 0x109   : > { %v1340_v8 = vadd.f32 %v1320_v7, %v1225_v26 }
 0x10a   : > { %v745_v34 = vadd.f32 %v2074_v28, %v653_v52 }
 0x10b   : > { %v1352_v14 = vadd.f32 %v2082_v2, %v1340_v8 }
 0x10c   : > { %v1069_v9 = vpop.f32.mrf.mxu2  ;;  %v980_v12 = vpop.f32.mrf.mxu1  ;;  %v884_v4 = vadd.f32 %v2076_v42, %v745_v34 }
 0x10d   : > { %vm1360_vm7 = vcmp.ge.f32.partialorder %v1352_v14, 0.0  ;;  %v1368_v20 = vmul.f32 0.2, %v1352_v14  ;;  %v1087_v13 = vadd.f32 %v1069_v9, %v995_v10  ;;  %v996_v56 = vadd.f32 %v980_v12, %v881_v53 }
 0x10e   : > { %v1208_v50 = vpop.f32.mrf.mxu3  ;;  %v1323_v22 = vpop.f32.mrf.mxu0 }
 0x10f   : > { %v1376_v6 = vsel %vm1360_vm7, %v1352_v14, %v1368_v20  ;;  %v1226_v31 = vadd.f32 %v1208_v50, %v1087_v13 }
 0x110   : > { %1384 = vst.msk [vmem:[%s2089_s28 + $0x10] sm:$0xff] %vm423_vm3, %v1376_v6 }
 0x111   : > { %v1341_v21 = vadd.f32 %v1323_v22, %v1226_v31 }
 0x113   : > { %v1353_v41 = vadd.f32 %v2082_v2, %v1341_v21 }
 0x114   : > { %v1072_v62 = vpop.f32.mrf.mxu2  ;;  %v983_v24 = vpop.f32.mrf.mxu1 }
 0x115   : > { %vm1361_vm8 = vcmp.ge.f32.partialorder %v1353_v41, 0.0  ;;  %v1369_v17 = vmul.f32 0.2, %v1353_v41  ;;  %v1088_v39 = vadd.f32 %v1072_v62, %v996_v56  ;;  %v997_v36 = vadd.f32 %v983_v24, %v882_v58 }
 0x116   : > { %v1211_v55 = vpop.f32.mrf.mxu3  ;;  %v1326_v27 = vpop.f32.mrf.mxu0 }
 0x117   : > { %v1377_v57 = vsel %vm1361_vm8, %v1353_v41, %v1369_v17  ;;  %v1227_v19 = vadd.f32 %v1211_v55, %v1088_v39 }
 0x118   : > { %1385 = vst.msk [vmem:[%s2089_s28 + $0x18] sm:$0xff] %vm423_vm3, %v1377_v57 }
 0x119   : > { %v1342_v35 = vadd.f32 %v1326_v27, %v1227_v19 }
 0x11b   : > { %v1354_v60 = vadd.f32 %v2082_v2, %v1342_v35 }
 0x11c   : > { %v1075_v37 = vpop.f32.mrf.mxu2  ;;  %v986_v49 = vpop.f32.mrf.mxu1 }
 0x11d   : > { %vm1362_vm9 = vcmp.ge.f32.partialorder %v1354_v60, 0.0  ;;  %v1370_v33 = vmul.f32 0.2, %v1354_v60  ;;  %v1089_v44 = vadd.f32 %v1075_v37, %v997_v36  ;;  %v998_v61 = vadd.f32 %v986_v49, %v883_v63 }
 0x11e   : > { %v1214_v59 = vpop.f32.mrf.mxu3  ;;  %v1329_v46 = vpop.f32.mrf.mxu0 }
 0x11f   : > { %v1378_v30 = vsel %vm1362_vm9, %v1354_v60, %v1370_v33  ;;  %v1228_v48 = vadd.f32 %v1214_v59, %v1089_v44 }
 0x120   : > { %1386 = vst.msk [vmem:[%s2089_s28 + $0x20] sm:$0xff] %vm423_vm3, %v1378_v30 }
 0x121   : > { %v1343_v3 = vadd.f32 %v1329_v46, %v1228_v48 }
 0x123   : > { %v1355_v43 = vadd.f32 %v2082_v2, %v1343_v3 }
 0x124   : > { %v1078_v47 = vpop.f32.mrf.mxu2  ;;  %v989_v0 = vpop.f32.mrf.mxu1 }
 0x125   : > { %vm1363_vm10 = vcmp.ge.f32.partialorder %v1355_v43, 0.0  ;;  %v1371_v5 = vmul.f32 0.2, %v1355_v43  ;;  %v1090_v7 = vadd.f32 %v1078_v47, %v998_v61  ;;  %v999_v11 = vadd.f32 %v989_v0, %v884_v4 }
 0x126   : > { %v1217_v38 = vpop.f32.mrf.mxu3  ;;  %v1332_v1 = vpop.f32.mrf.mxu0 }
 0x127   : > { %v1379_v15 = vsel %vm1363_vm10, %v1355_v43, %v1371_v5  ;;  %v1229_v51 = vadd.f32 %v1217_v38, %v1090_v7 }
 0x128   : > { %1387 = vst.msk [vmem:[%s2089_s28 + $0x28] sm:$0xff] %vm423_vm3, %v1379_v15 }
 0x129   : > { %v1344_v26 = vadd.f32 %v1332_v1, %v1229_v51 }
 0x12b   : > { %v1356_v23 = vadd.f32 %v2082_v2, %v1344_v26 }
 0x12c   : > { %v1081_v8 = vpop.f32.mrf.mxu2 }
 0x12d   : > { %vm1364_vm11 = vcmp.ge.f32.partialorder %v1356_v23, 0.0  ;;  %v1372_v28 = vmul.f32 0.2, %v1356_v23  ;;  %v1091_v10 = vadd.f32 %v1081_v8, %v999_v11 }
 0x12e   : > { %v1220_v14 = vpop.f32.mrf.mxu3  ;;  %v1335_v9 = vpop.f32.mrf.mxu0 }
 0x12f   : > { %v1380_v12 = vsel %vm1364_vm11, %v1356_v23, %v1372_v28  ;;  %v1230_v54 = vadd.f32 %v1220_v14, %v1091_v10 }
 0x130   : > { %1388 = vst.msk [vmem:[%s2089_s28 + $0x30] sm:$0xff] %vm423_vm3, %v1380_v12 }
 0x131   : > { %v1345_v20 = vadd.f32 %v1335_v9, %v1230_v54 }
 0x133   : > { %v1357_v13 = vadd.f32 %v2082_v2, %v1345_v20 }
 0x135   : > { %vm1365_vm12 = vcmp.ge.f32.partialorder %v1357_v13, 0.0  ;;  %v1373_v42 = vmul.f32 0.2, %v1357_v13 }
 0x137   : > { %v1381_v50 = vsel %vm1365_vm12, %v1357_v13, %v1373_v42 }
 0x138   : > { %1389 = vst.msk [vmem:[%s2089_s28 + $0x38] sm:$0xff] %vm423_vm3, %v1381_v50 }
 0x139 PF: > { %s14_s17 = sadd.s32 1, %s1646_s17   ;;  %s2150_s15 = smov %s1642_s16 }
 0x13a   : > { %p11_p5 = scmp.ge.s32.totalorder %s14_s17, 4   ;;  %s2151_s16 = smov %s2153_s18 }
 0x13c   :  { %13 = sbr.rel (!%p11_p5) target bundleno = 2 (0x2), region = 80 }

</bundles_post_ra>
